<compile_context>
chip_gen: v7x
topology: tpu7x:2x2x1
jax: 0.10.0
libtpu: 0.0.40
codegen_flags: <defaults>
</compile_context>

<pallas_src>
import jax
import jax.numpy as jnp
from jax.experimental import pallas as pl
from jax.experimental.pallas import tpu as pltpu

SCALE_WEIGHT = 0.5 ** 0.5


def _round_up(n, m):
    return ((n + m - 1) // m) * m


# ----------------------------------------------------------------------------
# Kernel: one (batch_tile, layer) grid step.
# ----------------------------------------------------------------------------
def cnn_decoder_kernel(src_len_ref,                       # SMEM scalar prefetch
                       emb_ref, src_tT_ref, src_c_ref,    # activations / memory
                       lin_w_ref, lin_b_ref,              # input projection
                       conv_w_ref, conv_b_ref,            # per-layer fused conv
                       attn_w_ref, attn_b_ref,            # per-layer attention
                       dec_out_ref, attn_out_ref,         # outputs
                       xpad_ref, base_ref):               # VMEM carries
    l = pl.program_id(1)
    bt, T, Ep = emb_ref.shape
    Hp = lin_w_ref.shape[1]
    Km1 = xpad_ref.shape[1] - T
    K = Km1 + 1
    Sp = attn_out_ref.shape[2]
    BT = bt * T

    # ---- first layer of this batch tile: linear projection, seed the carries
    @pl.when(l == 0)
    def _():
        emb = emb_ref[...].reshape(BT, Ep)
        x0 = (jnp.dot(emb, lin_w_ref[...], preferred_element_type=jnp.float32)
              + lin_b_ref[...]).reshape(bt, T, Hp)
        base_ref[...] = x0                                 # base_target_emb
        xpad_ref[...] = jnp.concatenate(                   # causal zero pad + x
            [jnp.zeros((bt, Km1, Hp), jnp.float32), x0], axis=1)

    # ---- GatedConv: causal conv as ONE (BT, K*Hp) @ (K*Hp, 2*Hp) matmul ----
    # Tap s reads x[t - s]; slices of the persistent padded carry (no per-layer
    # zero-pad concat, pure data movement off the MXU).
    xpad = xpad_ref[...]                                   # (bt, T+K-1, Hp)
    x = xpad[:, Km1:, :]                                   # current x
    parts = [xpad[:, Km1 - s:Km1 - s + T, :] for s in range(K)]
    x_stack = jnp.concatenate(parts, axis=-1).reshape(BT, K * Hp)
    conv = jnp.dot(x_stack, conv_w_ref[0],
                   preferred_element_type=jnp.float32) + conv_b_ref[0]
    out = conv[:, :Hp] * jax.nn.sigmoid(conv[:, Hp:])      # gated output (BT, Hp)

    # ---- ConvMultiStepAttention ----
    preatt = jnp.dot(out, attn_w_ref[0],
                     preferred_element_type=jnp.float32) + attn_b_ref[0]
    target = ((base_ref[...].reshape(BT, Hp) + preatt) * SCALE_WEIGHT
              ).reshape(bt, T, Hp)
    # keys pre-transposed to (bt, Hp, Sp): contraction dim is lane(target) x
    # sublane(keys) -> no in-kernel transpose.
    scores = jnp.einsum('bth,bhs->bts', target, src_tT_ref[...],
                        preferred_element_type=jnp.float32)     # (bt, T, Sp)
    src_col = jax.lax.broadcasted_iota(jnp.int32, (bt, T, Sp), 2)
    scores = jnp.where(src_col < src_len_ref[0], scores, -1e30)  # mask pad cols
    m = jnp.max(scores, axis=-1, keepdims=True)
    e = jnp.exp(scores - m)
    attn = e * pl.reciprocal(jnp.sum(e, axis=-1, keepdims=True), approx=True)
    ctx = jnp.einsum('bts,bsh->bth', attn, src_c_ref[...],
                     preferred_element_type=jnp.float32)         # (bt, T, Hp)

    # ---- residual update of the carried x ----
    x_new = (x + (ctx + out.reshape(bt, T, Hp)) * SCALE_WEIGHT) * SCALE_WEIGHT
    xpad_ref[:, Km1:, :] = x_new

    @pl.when(l == pl.num_programs(1) - 1)
    def _():
        dec_out_ref[...] = x_new      # lane-dense (Hp multiple of 128)
        attn_out_ref[...] = attn      # lane-dense (Sp multiple of 128)


# ----------------------------------------------------------------------------
# One-time packing (model init / init_state) — hoisted out of the step wrapper.
# ----------------------------------------------------------------------------
def pack_cnn_decoder_params(lin_w, lin_b, conv_wo, conv_wg, conv_bo, conv_bg,
                            attn_w, attn_b):
    """Pad to lane-dense sizes and fuse the K causal taps + out/gate halves of
    every GatedConv into one (K*Hp, 2*Hp) matrix per layer.  Row block s holds
    the weight of the tap reading x[t - s], i.e. original tap j = K-1-s."""
    E, H = lin_w.shape
    L, K = conv_wo.shape[:2]
    Ep, Hp = _round_up(E, 128), _round_up(H, 128)

    lin_w_p = jnp.pad(lin_w, ((0, Ep - E), (0, Hp - H)))
    lin_b_p = jnp.pad(lin_b, ((0, 0), (0, Hp - H)))
    wo_s = jnp.pad(conv_wo[:, ::-1], ((0, 0), (0, 0), (0, Hp - H), (0, Hp - H)))
    wg_s = jnp.pad(conv_wg[:, ::-1], ((0, 0), (0, 0), (0, Hp - H), (0, Hp - H)))
    conv_w = jnp.concatenate([wo_s, wg_s], axis=-1).reshape(L, K * Hp, 2 * Hp)
    conv_b = jnp.concatenate(
        [jnp.pad(conv_bo, ((0, 0), (0, 0), (0, Hp - H))),
         jnp.pad(conv_bg, ((0, 0), (0, 0), (0, Hp - H)))], axis=-1)
    attn_w_p = jnp.pad(attn_w, ((0, 0), (0, Hp - H), (0, Hp - H)))
    attn_b_p = jnp.pad(attn_b, ((0, 0), (0, 0), (0, Hp - H)))
    return dict(lin_w=lin_w_p, lin_b=lin_b_p, conv_w=conv_w, conv_b=conv_b,
                attn_w=attn_w_p, attn_b=attn_b_p,
                E=E, H=H, K=K, L=L, Ep=Ep, Hp=Hp)


def pack_cnn_decoder_memory(memory_bank, enc_hidden):
    """init_state: state['src'] = (memory_bank + enc_hidden) * SCALE_WEIGHT.
    Keys are pre-transposed to (B, Hp, Sp); values to (B, Sp, Hp); both
    zero-padded lane-dense.  src_len is a runtime scalar."""
    S, B, H = memory_bank.shape
    Hp, Sp = _round_up(H, 128), _round_up(S, 128)
    src_state = (memory_bank + enc_hidden) * SCALE_WEIGHT
    src_t_T = jnp.pad(jnp.transpose(memory_bank, (1, 2, 0)),
                      ((0, 0), (0, Hp - H), (0, Sp - S)))        # (B, Hp, Sp)
    src_c = jnp.pad(jnp.transpose(src_state, (1, 0, 2)),
                    ((0, 0), (0, Sp - S), (0, Hp - H)))          # (B, Sp, Hp)
    return dict(src_t_T=src_t_T, src_c=src_c,
                src_len=jnp.array([S], jnp.int32), S=S, Sp=Sp)


# ----------------------------------------------------------------------------
# Per-step forward wrapper.
# ----------------------------------------------------------------------------
def cnn_decoder_forward(params, memory, tgt_emb, batch_tile=None):
    f32 = jnp.float32
    B, T, E = tgt_emb.shape
    Ep, Hp = params['Ep'], params['Hp']
    H, K, L = params['H'], params['K'], params['L']
    S, Sp = memory['S'], memory['Sp']
    assert L >= 1, "CNNDecoder needs at least one layer"
    bt = batch_tile or B          # keep B*T folded into matmul M by default
    assert B % bt == 0
    NB = B // bt

    emb_p = jnp.pad(tgt_emb.astype(f32), ((0, 0), (0, 0), (0, Ep - E)))

    in_specs = [
        pl.BlockSpec((bt, T, Ep), lambda b, l, sl: (b, 0, 0)),      # emb
        pl.BlockSpec((bt, Hp, Sp), lambda b, l, sl: (b, 0, 0)),     # keys^T
        pl.BlockSpec((bt, Sp, Hp), lambda b, l, sl: (b, 0, 0)),     # values
        pl.BlockSpec((Ep, Hp), lambda b, l, sl: (0, 0)),            # lin_w
        pl.BlockSpec((1, Hp), lambda b, l, sl: (0, 0)),             # lin_b
        pl.BlockSpec((1, K * Hp, 2 * Hp), lambda b, l, sl: (l, 0, 0)),  # conv_w[l]
        pl.BlockSpec((1, 1, 2 * Hp), lambda b, l, sl: (l, 0, 0)),       # conv_b[l]
        pl.BlockSpec((1, Hp, Hp), lambda b, l, sl: (l, 0, 0)),          # attn_w[l]
        pl.BlockSpec((1, 1, Hp), lambda b, l, sl: (l, 0, 0)),           # attn_b[l]
    ]
    out_specs = (
        pl.BlockSpec((bt, T, Hp), lambda b, l, sl: (b, 0, 0)),
        pl.BlockSpec((bt, T, Sp), lambda b, l, sl: (b, 0, 0)),
    )
    scratch = [
        pltpu.VMEM((bt, T + K - 1, Hp), f32),   # causally padded x carry
        pltpu.VMEM((bt, T, Hp), f32),           # base_target_emb carry
    ]

    flops = (2 * B * T * Ep * Hp
             + L * (2 * B * T * (K * Hp) * (2 * Hp)
                    + 2 * B * T * Hp * Hp
                    + 4 * B * T * Sp * Hp))
    trans = L * (B * T * Hp + B * T * Sp)
    bytes_accessed = 4 * (emb_p.size + memory['src_t_T'].size
                          + memory['src_c'].size + params['lin_w'].size
                          + params['lin_b'].size + params['conv_w'].size
                          + params['conv_b'].size + params['attn_w'].size
                          + params['attn_b'].size + B * T * Hp + B * T * Sp)

    dec_p, attn_p = pl.pallas_call(
        cnn_decoder_kernel,
        out_shape=(jax.ShapeDtypeStruct((B, T, Hp), f32),
                   jax.ShapeDtypeStruct((B, T, Sp), f32)),
        grid_spec=pltpu.PrefetchScalarGridSpec(
            num_scalar_prefetch=1,
            grid=(NB, L),
            in_specs=in_specs,
            out_specs=out_specs,
            scratch_shapes=scratch),
        compiler_params=pltpu.CompilerParams(
            dimension_semantics=("parallel", "arbitrary"),
            vmem_limit_bytes=48 * 1024 * 1024),   # explicit, < v7x 64 MiB physical
        cost_estimate=pl.CostEstimate(flops=int(flops),
                                      transcendentals=int(trans),
                                      bytes_accessed=int(bytes_accessed)),
    )(memory['src_len'], emb_p, memory['src_t_T'], memory['src_c'],
      params['lin_w'], params['lin_b'], params['conv_w'], params['conv_b'],
      params['attn_w'], params['attn_b'])

    # strip the lane padding outside the kernel
    return dec_p[:, :, :H], attn_p[:, :, :S]


# ----------------------------------------------------------------------------
# Pure-JAX mirror of the PyTorch CNNDecoder.forward (prev_input=None, eval).
# ----------------------------------------------------------------------------
def reference_forward(tgt_emb, src_t, src_c, lin_w, lin_b,
                      conv_wo, conv_wg, conv_bo, conv_bg, attn_w, attn_b):
    B, T, _ = tgt_emb.shape
    H = lin_w.shape[1]
    L, K = conv_wo.shape[0], conv_wo.shape[1]
    x = tgt_emb @ lin_w + lin_b[0]
    base = x
    attn = None
    for l in range(L):
        xpad = jnp.pad(x, ((0, 0), (K - 1, 0), (0, 0)))
        acc_o = jnp.zeros((B, T, H)) + conv_bo[l]
        acc_g = jnp.zeros((B, T, H)) + conv_bg[l]
        for j in range(K):
            seg = xpad[:, j:j + T, :]
            acc_o = acc_o + seg @ conv_wo[l, j]
            acc_g = acc_g + seg @ conv_wg[l, j]
        out = acc_o * jax.nn.sigmoid(acc_g)
        preatt = out @ attn_w[l] + attn_b[l]
        target = (base + preatt) * SCALE_WEIGHT
        scores = jnp.einsum('bth,bsh->bts', target, src_t)
        attn = jax.nn.softmax(scores, axis=-1)
        ctx = jnp.einsum('bts,bsh->bth', attn, src_c)
        x = (x + (ctx + out) * SCALE_WEIGHT) * SCALE_WEIGHT
    return x, attn


if __name__ == "__main__":
    # small, module-consistent shapes
    B, T, S = 2, 8, 12          # batch, tgt_len, src_len
    E, H = 16, 32               # embedding_size, hidden_size
    K, L = 3, 2                 # cnn_kernel_width, num_layers
    V = 50                      # vocab size for the synthetic embedding table

    key = jax.random.PRNGKey(0)
    ks = jax.random.split(key, 13)

    emb_table = jax.random.normal(ks[0], (V, E), jnp.float32) * 0.1
    tgt = jax.random.randint(ks[1], (T, B), 0, V)                        # (tgt_len, batch)
    memory_bank = jax.random.normal(ks[2], (S, B, H), jnp.float32) * 0.1
    enc_hidden = jax.random.normal(ks[3], (S, B, H), jnp.float32) * 0.1
    lin_w = jax.random.normal(ks[4], (E, H), jnp.float32) * 0.1
    lin_b = jax.random.normal(ks[5], (1, H), jnp.float32) * 0.1
    conv_wo = jax.random.normal(ks[6], (L, K, H, H), jnp.float32) * 0.1  # "out" half
    conv_wg = jax.random.normal(ks[7], (L, K, H, H), jnp.float32) * 0.1  # "gate" half
    conv_bo = jax.random.normal(ks[8], (L, 1, H), jnp.float32) * 0.1
    conv_bg = jax.random.normal(ks[9], (L, 1, H), jnp.float32) * 0.1
    attn_w = jax.random.normal(ks[10], (L, H, H), jnp.float32) * 0.1
    attn_b = jax.random.normal(ks[11], (L, 1, H), jnp.float32) * 0.1

    # --- one-time packing (model init / init_state), NOT per decode step ----
    params = pack_cnn_decoder_params(lin_w, lin_b, conv_wo, conv_wg,
                                     conv_bo, conv_bg, attn_w, attn_b)
    memory = pack_cnn_decoder_memory(memory_bank, enc_hidden)
    jax.block_until_ready((params, memory))

    # --- per-step forward glue (embedding lookup + transposes) --------------
    emb = jnp.take(emb_table, tgt, axis=0)            # (T, B, E)
    tgt_emb = jnp.transpose(emb, (1, 0, 2))           # (B, T, E)

    dec_btH, attn_bts = cnn_decoder_forward(params, memory, tgt_emb)
    jax.block_until_ready((dec_btH, attn_bts))

    # dec_outs: (tgt_len, batch, hidden);  attns['std']: (batch, tgt_len, src_len)
    dec_outs = jnp.transpose(dec_btH, (1, 0, 2))
    attns_std = attn_bts

    # verify against pure-JAX reference
    src_state = (memory_bank + enc_hidden) * SCALE_WEIGHT
    src_t = jnp.transpose(memory_bank, (1, 0, 2))     # (B, S, H)
    src_c = jnp.transpose(src_state, (1, 0, 2))       # (B, S, H)
    ref_x, ref_attn = reference_forward(
        tgt_emb, src_t, src_c, lin_w, lin_b,
        conv_wo, conv_wg, conv_bo, conv_bg, attn_w, attn_b)
    ref_dec_outs = jnp.transpose(ref_x, (1, 0, 2))

    assert dec_outs.shape == (T, B, H)
    assert attns_std.shape == (B, T, S)
    # Only deviation from the f32 reference is the EUP approx-reciprocal in the
    # softmax normalisation, hence the slightly relaxed tolerance.
    assert jnp.allclose(dec_outs, ref_dec_outs, atol=1e-3, rtol=1e-3)
    assert jnp.allclose(attns_std, ref_attn, atol=1e-3, rtol=1e-3)

    print("KERNEL_OK")
</pallas_src>

<mosaic_0001>
module attributes {stable_mosaic.version = 11 : i64} {
  func.func @cnn_decoder_kernel(%arg0: i32, %arg1: i32, %arg2: memref<1xi32, #tpu.memory_space<smem>>, %arg3: memref<2x8x128xf32, #tpu.memory_space<vmem>>, %arg4: memref<2x128x128xf32, #tpu.memory_space<vmem>>, %arg5: memref<2x128x128xf32, #tpu.memory_space<vmem>>, %arg6: memref<128x128xf32, #tpu.memory_space<vmem>>, %arg7: memref<1x128xf32, #tpu.memory_space<vmem>>, %arg8: memref<1x384x256xf32, #tpu.memory_space<vmem>>, %arg9: memref<1x1x256xf32, #tpu.memory_space<vmem>>, %arg10: memref<1x128x128xf32, #tpu.memory_space<vmem>>, %arg11: memref<1x1x128xf32, #tpu.memory_space<vmem>>, %arg12: memref<2x8x128xf32, #tpu.memory_space<vmem>>, %arg13: memref<2x8x128xf32, #tpu.memory_space<vmem>>, %arg14: memref<2x10x128xf32, #tpu.memory_space<vmem>>, %arg15: memref<2x8x128xf32, #tpu.memory_space<vmem>>) attributes {dimension_semantics = [#tpu.dimension_semantics<parallel>, #tpu.dimension_semantics<arbitrary>], iteration_bounds = array<i64: 1, 2>, scalar_prefetch = 1 : i64, scratch_operands = 2 : i64, tpu.core_type = #tpu.core_type<tc>, window_params = [{transform_indices = @transform_0, window_bounds = array<i64: 2, 8, 128>}, {transform_indices = @transform_1, window_bounds = array<i64: 2, 128, 128>}, {transform_indices = @transform_2, window_bounds = array<i64: 2, 128, 128>}, {pipeline_mode = #tpu.pipeline_mode<synchronous>, transform_indices = @transform_3, window_bounds = array<i64: 128, 128>}, {pipeline_mode = #tpu.pipeline_mode<synchronous>, transform_indices = @transform_4, window_bounds = array<i64: 1, 128>}, {transform_indices = @transform_5, window_bounds = array<i64: 1, 384, 256>}, {transform_indices = @transform_6, window_bounds = array<i64: 1, 1, 256>}, {transform_indices = @transform_7, window_bounds = array<i64: 1, 128, 128>}, {transform_indices = @transform_8, window_bounds = array<i64: 1, 1, 128>}, {transform_indices = @transform_9, window_bounds = array<i64: 2, 8, 128>}, {transform_indices = @transform_10, window_bounds = array<i64: 2, 8, 128>}]} {
    %c0_i32 = arith.constant 0 : i32
    %0 = arith.cmpi eq, %arg1, %c0_i32 : i32
    %1 = arith.extui %0 : i1 to i32
    %c0_i32_0 = arith.constant 0 : i32
    %2 = arith.cmpi ne, %1, %c0_i32_0 : i32
    scf.if %2 {
      %c0_38 = arith.constant 0 : index
      %c0_39 = arith.constant 0 : index
      %c0_40 = arith.constant 0 : index
      %69 = vector.load %arg3[%c0_38, %c0_39, %c0_40] : memref<2x8x128xf32, #tpu.memory_space<vmem>>, vector<2x8x128xf32>
      %70 = vector.shape_cast %69 : vector<2x8x128xf32> to vector<16x128xf32>
      %c0_41 = arith.constant 0 : index
      %c0_42 = arith.constant 0 : index
      %71 = vector.load %arg6[%c0_41, %c0_42] : memref<128x128xf32, #tpu.memory_space<vmem>>, vector<128x128xf32>
      %cst_43 = arith.constant dense<0.000000e+00> : vector<16x128xf32>
      %72 = tpu.matmul %70, %71, %cst_43 {dimension_numbers = #tpu.dot_dimension_numbers<[1], [0], [0], [1], [0, 0, 1, 1], [], []>} : vector<16x128xf32>, vector<128x128xf32>, vector<16x128xf32> -> vector<16x128xf32>
      %c0_44 = arith.constant 0 : index
      %c0_45 = arith.constant 0 : index
      %73 = vector.load %arg7[%c0_44, %c0_45] : memref<1x128xf32, #tpu.memory_space<vmem>>, vector<1x128xf32>
      %74 = vector.broadcast %73 : vector<1x128xf32> to vector<16x128xf32>
      %75 = arith.addf %72, %74 : vector<16x128xf32>
      %76 = vector.shape_cast %75 : vector<16x128xf32> to vector<2x8x128xf32>
      %c0_46 = arith.constant 0 : index
      %c0_47 = arith.constant 0 : index
      %c0_48 = arith.constant 0 : index
      %77 = vector.load %arg15[%c0_46, %c0_47, %c0_48] : memref<2x8x128xf32, #tpu.memory_space<vmem>>, vector<2x8x128xf32>
      tpu.vector_store %arg15[%c0_46, %c0_47, %c0_48], %76 {strides = array<i32>} : memref<2x8x128xf32, #tpu.memory_space<vmem>>, vector<2x8x128xf32>,
      %cst_49 = arith.constant 0.000000e+00 : f32
      %78 = vector.broadcast %cst_49 : f32 to vector<2x2x128xf32>
      %79 = tpu.concatenate %78, %76 in 1 : vector<2x2x128xf32>, vector<2x8x128xf32> -> vector<2x10x128xf32>
      %c0_50 = arith.constant 0 : index
      %c0_51 = arith.constant 0 : index
      %c0_52 = arith.constant 0 : index
      %80 = vector.load %arg14[%c0_50, %c0_51, %c0_52] : memref<2x10x128xf32, #tpu.memory_space<vmem>>, vector<2x10x128xf32>
      tpu.vector_store %arg14[%c0_50, %c0_51, %c0_52], %79 {strides = array<i32>} : memref<2x10x128xf32, #tpu.memory_space<vmem>>, vector<2x10x128xf32>,
    } else {
    }
    %c0 = arith.constant 0 : index
    %c0_1 = arith.constant 0 : index
    %c0_2 = arith.constant 0 : index
    %3 = vector.load %arg14[%c0, %c0_1, %c0_2] : memref<2x10x128xf32, #tpu.memory_space<vmem>>, vector<2x10x128xf32>
    %4 = vector.extract_strided_slice %3 {offsets = [0, 2, 0], sizes = [2, 8, 128], strides = [1, 1, 1]} : vector<2x10x128xf32> to vector<2x8x128xf32>
    %5 = vector.extract_strided_slice %3 {offsets = [0, 2, 0], sizes = [2, 8, 128], strides = [1, 1, 1]} : vector<2x10x128xf32> to vector<2x8x128xf32>
    %6 = vector.extract_strided_slice %3 {offsets = [0, 1, 0], sizes = [2, 8, 128], strides = [1, 1, 1]} : vector<2x10x128xf32> to vector<2x8x128xf32>
    %7 = vector.extract_strided_slice %3 {offsets = [0, 0, 0], sizes = [2, 8, 128], strides = [1, 1, 1]} : vector<2x10x128xf32> to vector<2x8x128xf32>
    %8 = tpu.concatenate %5, %6, %7 in 2 : vector<2x8x128xf32>, vector<2x8x128xf32>, vector<2x8x128xf32> -> vector<2x8x384xf32>
    %9 = vector.shape_cast %8 : vector<2x8x384xf32> to vector<16x384xf32>
    %c0_3 = arith.constant 0 : index
    %c0_4 = arith.constant 0 : index
    %c0_5 = arith.constant 0 : index
    %10 = vector.load %arg8[%c0_3, %c0_4, %c0_5] : memref<1x384x256xf32, #tpu.memory_space<vmem>>, vector<1x384x256xf32>
    %11 = vector.shape_cast %10 : vector<1x384x256xf32> to vector<384x256xf32>
    %cst = arith.constant dense<0.000000e+00> : vector<16x256xf32>
    %12 = tpu.matmul %9, %11, %cst {dimension_numbers = #tpu.dot_dimension_numbers<[1], [0], [0], [1], [0, 0, 1, 1], [], []>} : vector<16x384xf32>, vector<384x256xf32>, vector<16x256xf32> -> vector<16x256xf32>
    %c0_6 = arith.constant 0 : index
    %c0_7 = arith.constant 0 : index
    %c0_8 = arith.constant 0 : index
    %13 = vector.load %arg9[%c0_6, %c0_7, %c0_8] : memref<1x1x256xf32, #tpu.memory_space<vmem>>, vector<1x1x256xf32>
    %14 = vector.shape_cast %13 : vector<1x1x256xf32> to vector<1x256xf32>
    %15 = vector.broadcast %14 : vector<1x256xf32> to vector<16x256xf32>
    %16 = arith.addf %12, %15 : vector<16x256xf32>
    %17 = vector.extract_strided_slice %16 {offsets = [0, 0], sizes = [16, 128], strides = [1, 1]} : vector<16x256xf32> to vector<16x128xf32>
    %18 = vector.extract_strided_slice %16 {offsets = [0, 128], sizes = [16, 128], strides = [1, 1]} : vector<16x256xf32> to vector<16x128xf32>
    %19 = arith.negf %18 : vector<16x128xf32>
    %20 = math.exp %19 : vector<16x128xf32>
    %cst_9 = arith.constant 1.000000e+00 : f32
    %21 = vector.broadcast %cst_9 : f32 to vector<16x128xf32>
    %22 = arith.addf %21, %20 : vector<16x128xf32>
    %23 = arith.divf %21, %22 : vector<16x128xf32>
    %24 = arith.mulf %17, %23 : vector<16x128xf32>
    %c0_10 = arith.constant 0 : index
    %c0_11 = arith.constant 0 : index
    %c0_12 = arith.constant 0 : index
    %25 = vector.load %arg10[%c0_10, %c0_11, %c0_12] : memref<1x128x128xf32, #tpu.memory_space<vmem>>, vector<1x128x128xf32>
    %26 = vector.shape_cast %25 : vector<1x128x128xf32> to vector<128x128xf32>
    %cst_13 = arith.constant dense<0.000000e+00> : vector<16x128xf32>
    %27 = tpu.matmul %24, %26, %cst_13 {dimension_numbers = #tpu.dot_dimension_numbers<[1], [0], [0], [1], [0, 0, 1, 1], [], []>} : vector<16x128xf32>, vector<128x128xf32>, vector<16x128xf32> -> vector<16x128xf32>
    %c0_14 = arith.constant 0 : index
    %c0_15 = arith.constant 0 : index
    %c0_16 = arith.constant 0 : index
    %28 = vector.load %arg11[%c0_14, %c0_15, %c0_16] : memref<1x1x128xf32, #tpu.memory_space<vmem>>, vector<1x1x128xf32>
    %29 = vector.shape_cast %28 : vector<1x1x128xf32> to vector<1x128xf32>
    %30 = vector.broadcast %29 : vector<1x128xf32> to vector<16x128xf32>
    %31 = arith.addf %27, %30 : vector<16x128xf32>
    %c0_17 = arith.constant 0 : index
    %c0_18 = arith.constant 0 : index
    %c0_19 = arith.constant 0 : index
    %32 = vector.load %arg15[%c0_17, %c0_18, %c0_19] : memref<2x8x128xf32, #tpu.memory_space<vmem>>, vector<2x8x128xf32>
    %33 = vector.shape_cast %32 : vector<2x8x128xf32> to vector<16x128xf32>
    %34 = arith.addf %33, %31 : vector<16x128xf32>
    %cst_20 = arith.constant 0.707106769 : f32
    %35 = vector.broadcast %cst_20 : f32 to vector<16x128xf32>
    %36 = arith.mulf %34, %35 : vector<16x128xf32>
    %37 = vector.shape_cast %36 : vector<16x128xf32> to vector<2x8x128xf32>
    %c0_21 = arith.constant 0 : index
    %c0_22 = arith.constant 0 : index
    %c0_23 = arith.constant 0 : index
    %38 = vector.load %arg4[%c0_21, %c0_22, %c0_23] : memref<2x128x128xf32, #tpu.memory_space<vmem>>, vector<2x128x128xf32>
    "tpu.trace_start"() <{level = 10 : i32, message = "bth,bhs->bts"}> : () -> ()
    %cst_24 = arith.constant dense<0.000000e+00> : vector<2x8x128xf32>
    %39 = tpu.matmul %37, %38, %cst_24 {dimension_numbers = #tpu.dot_dimension_numbers<[2], [1], [1], [2], [0, 0, 0, 1, 1, 2], [0], [0]>} : vector<2x8x128xf32>, vector<2x128x128xf32>, vector<2x8x128xf32> -> vector<2x8x128xf32>
    "tpu.trace_stop"() : () -> ()
    %40 = tpu.iota {dimensions = array<i32: 2>} : vector<2x8x128xi32>
    %c0_25 = arith.constant 0 : index
    %41 = memref.load %arg2[%c0_25] : memref<1xi32, #tpu.memory_space<smem>>
    %42 = vector.broadcast %41 : i32 to vector<2x8x128xi32>
    %43 = arith.cmpi slt, %40, %42 : vector<2x8x128xi32>
    %cst_26 = arith.constant -1.000000e+30 : f32
    %44 = vector.broadcast %cst_26 : f32 to vector<2x8x128xf32>
    %45 = arith.select %43, %39, %44 : vector<2x8x128xi1>, vector<2x8x128xf32>
    %cst_27 = arith.constant dense<0xFF800000> : vector<2x8xf32>
    %46 = vector.multi_reduction <maximumf>, %45, %cst_27 [2] : vector<2x8x128xf32> to vector<2x8xf32>
    %47 = vector.shape_cast %46 : vector<2x8xf32> to vector<2x8x1xf32>
    %48 = vector.broadcast %47 : vector<2x8x1xf32> to vector<2x8x128xf32>
    %49 = arith.subf %45, %48 : vector<2x8x128xf32>
    %50 = math.exp %49 : vector<2x8x128xf32>
    %cst_28 = arith.constant dense<0.000000e+00> : vector<2x8xf32>
    %51 = vector.multi_reduction <add>, %50, %cst_28 [2] : vector<2x8x128xf32> to vector<2x8xf32>
    %52 = vector.shape_cast %51 : vector<2x8xf32> to vector<2x8x1xf32>
    %53 = tpu.reciprocal %52 {approx = true} : vector<2x8x1xf32> -> vector<2x8x1xf32>
    %54 = vector.broadcast %53 : vector<2x8x1xf32> to vector<2x8x128xf32>
    %55 = arith.mulf %50, %54 : vector<2x8x128xf32>
    %c0_29 = arith.constant 0 : index
    %c0_30 = arith.constant 0 : index
    %c0_31 = arith.constant 0 : index
    %56 = vector.load %arg5[%c0_29, %c0_30, %c0_31] : memref<2x128x128xf32, #tpu.memory_space<vmem>>, vector<2x128x128xf32>
    "tpu.trace_start"() <{level = 10 : i32, message = "bts,bsh->bth"}> : () -> ()
    %cst_32 = arith.constant dense<0.000000e+00> : vector<2x8x128xf32>
    %57 = tpu.matmul %55, %56, %cst_32 {dimension_numbers = #tpu.dot_dimension_numbers<[2], [1], [1], [2], [0, 0, 0, 1, 1, 2], [0], [0]>} : vector<2x8x128xf32>, vector<2x128x128xf32>, vector<2x8x128xf32> -> vector<2x8x128xf32>
    "tpu.trace_stop"() : () -> ()
    %58 = vector.shape_cast %24 : vector<16x128xf32> to vector<2x8x128xf32>
    %59 = arith.addf %57, %58 : vector<2x8x128xf32>
    %cst_33 = arith.constant 0.707106769 : f32
    %60 = vector.broadcast %cst_33 : f32 to vector<2x8x128xf32>
    %61 = arith.mulf %59, %60 : vector<2x8x128xf32>
    %62 = arith.addf %4, %61 : vector<2x8x128xf32>
    %cst_34 = arith.constant 0.707106769 : f32
    %63 = vector.broadcast %cst_34 : f32 to vector<2x8x128xf32>
    %64 = arith.mulf %62, %63 : vector<2x8x128xf32>
    %c0_35 = arith.constant 0 : index
    %c2 = arith.constant 2 : index
    %c0_36 = arith.constant 0 : index
    %65 = vector.load %arg14[%c0_35, %c2, %c0_36] : memref<2x10x128xf32, #tpu.memory_space<vmem>>, vector<2x8x128xf32>
    tpu.vector_store %arg14[%c0_35, %c2, %c0_36], %64 {strides = array<i32>} : memref<2x10x128xf32, #tpu.memory_space<vmem>>, vector<2x8x128xf32>,
    %c1_i32 = arith.constant 1 : i32
    %66 = arith.cmpi eq, %arg1, %c1_i32 : i32
    %67 = arith.extui %66 : i1 to i32
    %c0_i32_37 = arith.constant 0 : i32
    %68 = arith.cmpi ne, %67, %c0_i32_37 : i32
    scf.if %68 {
      %c0_38 = arith.constant 0 : index
      %c0_39 = arith.constant 0 : index
      %c0_40 = arith.constant 0 : index
      %69 = vector.load %arg12[%c0_38, %c0_39, %c0_40] : memref<2x8x128xf32, #tpu.memory_space<vmem>>, vector<2x8x128xf32>
      tpu.vector_store %arg12[%c0_38, %c0_39, %c0_40], %64 {strides = array<i32>} : memref<2x8x128xf32, #tpu.memory_space<vmem>>, vector<2x8x128xf32>,
      %c0_41 = arith.constant 0 : index
      %c0_42 = arith.constant 0 : index
      %c0_43 = arith.constant 0 : index
      %70 = vector.load %arg13[%c0_41, %c0_42, %c0_43] : memref<2x8x128xf32, #tpu.memory_space<vmem>>, vector<2x8x128xf32>
      tpu.vector_store %arg13[%c0_41, %c0_42, %c0_43], %55 {strides = array<i32>} : memref<2x8x128xf32, #tpu.memory_space<vmem>>, vector<2x8x128xf32>,
    } else {
    }
    return
  }
  func.func @transform_0(%arg0: i32, %arg1: i32, %arg2: memref<1xi32, #tpu.memory_space<smem>>) -> (i32, i32, i32) {
    %c0_i32 = arith.constant 0 : i32
    %c0_i32_0 = arith.constant 0 : i32
    %c0_i32_1 = arith.constant 0 : i32
    return %arg0, %c0_i32, %c0_i32_0 : i32, i32, i32
  }
  func.func @transform_1(%arg0: i32, %arg1: i32, %arg2: memref<1xi32, #tpu.memory_space<smem>>) -> (i32, i32, i32) {
    %c0_i32 = arith.constant 0 : i32
    %c0_i32_0 = arith.constant 0 : i32
    %c0_i32_1 = arith.constant 0 : i32
    return %arg0, %c0_i32, %c0_i32_0 : i32, i32, i32
  }
  func.func @transform_2(%arg0: i32, %arg1: i32, %arg2: memref<1xi32, #tpu.memory_space<smem>>) -> (i32, i32, i32) {
    %c0_i32 = arith.constant 0 : i32
    %c0_i32_0 = arith.constant 0 : i32
    %c0_i32_1 = arith.constant 0 : i32
    return %arg0, %c0_i32, %c0_i32_0 : i32, i32, i32
  }
  func.func @transform_3(%arg0: i32, %arg1: i32, %arg2: memref<1xi32, #tpu.memory_space<smem>>) -> (i32, i32) {
    %c0_i32 = arith.constant 0 : i32
    %c0_i32_0 = arith.constant 0 : i32
    %c0_i32_1 = arith.constant 0 : i32
    return %c0_i32, %c0_i32_0 : i32, i32
  }
  func.func @transform_4(%arg0: i32, %arg1: i32, %arg2: memref<1xi32, #tpu.memory_space<smem>>) -> (i32, i32) {
    %c0_i32 = arith.constant 0 : i32
    %c0_i32_0 = arith.constant 0 : i32
    %c0_i32_1 = arith.constant 0 : i32
    return %c0_i32, %c0_i32_0 : i32, i32
  }
  func.func @transform_5(%arg0: i32, %arg1: i32, %arg2: memref<1xi32, #tpu.memory_space<smem>>) -> (i32, i32, i32) {
    %c0_i32 = arith.constant 0 : i32
    %c0_i32_0 = arith.constant 0 : i32
    %c0_i32_1 = arith.constant 0 : i32
    return %arg1, %c0_i32, %c0_i32_0 : i32, i32, i32
  }
  func.func @transform_6(%arg0: i32, %arg1: i32, %arg2: memref<1xi32, #tpu.memory_space<smem>>) -> (i32, i32, i32) {
    %c0_i32 = arith.constant 0 : i32
    %c0_i32_0 = arith.constant 0 : i32
    %c0_i32_1 = arith.constant 0 : i32
    return %arg1, %c0_i32, %c0_i32_0 : i32, i32, i32
  }
  func.func @transform_7(%arg0: i32, %arg1: i32, %arg2: memref<1xi32, #tpu.memory_space<smem>>) -> (i32, i32, i32) {
    %c0_i32 = arith.constant 0 : i32
    %c0_i32_0 = arith.constant 0 : i32
    %c0_i32_1 = arith.constant 0 : i32
    return %arg1, %c0_i32, %c0_i32_0 : i32, i32, i32
  }
  func.func @transform_8(%arg0: i32, %arg1: i32, %arg2: memref<1xi32, #tpu.memory_space<smem>>) -> (i32, i32, i32) {
    %c0_i32 = arith.constant 0 : i32
    %c0_i32_0 = arith.constant 0 : i32
    %c0_i32_1 = arith.constant 0 : i32
    return %arg1, %c0_i32, %c0_i32_0 : i32, i32, i32
  }
  func.func @transform_9(%arg0: i32, %arg1: i32, %arg2: memref<1xi32, #tpu.memory_space<smem>>) -> (i32, i32, i32) {
    %c0_i32 = arith.constant 0 : i32
    %c0_i32_0 = arith.constant 0 : i32
    %c0_i32_1 = arith.constant 0 : i32
    return %arg0, %c0_i32, %c0_i32_0 : i32, i32, i32
  }
  func.func @transform_10(%arg0: i32, %arg1: i32, %arg2: memref<1xi32, #tpu.memory_space<smem>>) -> (i32, i32, i32) {
    %c0_i32 = arith.constant 0 : i32
    %c0_i32_0 = arith.constant 0 : i32
    %c0_i32_1 = arith.constant 0 : i32
    return %arg0, %c0_i32, %c0_i32_0 : i32, i32, i32
  }
}

</mosaic_0001>

<bundles_post_ra>
// kernel: tpu_custom_call.1
= control target key start
LH: loop header
LB: loop body
LE: loop exit
PB: predicated region body
PF: predicated region fallthrough
CT: control target
= control target key end

     0   :  { %s3358_s0 = inlined_call_operand.<no memory space> [shape: s32[1], index: 0, kind: input, shape index: {}]   ;;  %s3359_s1 = inlined_call_operand.hbm [shape: f32[2,8,128], index: 1, kind: input, shape index: {}]   ;;  %s3360_s2 = inlined_call_operand.hbm [shape: f32[2,128,128], index: 2, kind: input, shape index: {}]   ;;  %s3361_s3 = inlined_call_operand.hbm [shape: f32[2,128,128], index: 3, kind: input, shape index: {}]   ;;  %s3362_s4 = inlined_call_operand.hbm [shape: f32[128,128], index: 4, kind: input, shape index: {}]   ;;  %s3363_s5 = inlined_call_operand.vmem [shape: f32[1,128], index: 5, kind: input, shape index: {}]   ;;  %s3364_s6 = inlined_call_operand.hbm [shape: f32[2,384,256], index: 6, kind: input, shape index: {}]   ;;  %s3365_s7 = inlined_call_operand.vmem [shape: f32[2,1,256], index: 7, kind: input, shape index: {}]   ;;  %s3366_s8 = inlined_call_operand.hbm [shape: f32[2,128,128], index: 8, kind: input, shape index: {}]   ;;  %s3367_s9 = inlined_call_operand.vmem [shape: f32[2,1,128], index: 9, kind: input, shape index: {}]   ;;  %s3368_s10 = inlined_call_operand.hbm [shape: f32[2,8,128], index: 10, kind: output, shape index: {0}]   ;;  %s3369_s11 = inlined_call_operand.hbm [shape: f32[2,8,128], index: 11, kind: output, shape index: {1}]  }
   0x1   :  { %3384 = sst [smem:[#allocation27_spill]] %s3359_s1 }
   0x2   :  { %3385 = sst [smem:[#allocation28_spill]] %s3360_s2 }
   0x3   :  { %3386 = sst [smem:[#allocation29_spill]] %s3363_s5 }
   0x4   :  { %3387 = sst [smem:[#allocation30_spill]] %s3364_s6 }
   0x5   :  { %3388 = sst [smem:[#allocation31_spill]] %s3368_s10 }
   0x6   :  { %3389 = sst [smem:[#allocation32_spill]] %s3369_s11 }
   0x7   :  { %17 = sst [smem:[#allocation5]] %s3358_s0 }
   0x8   :  { %18 = vsyncpa [#allocation7], 0 }
   0x9   :  { %19 = vsyncpa [#allocation10], 0 }
   0xa   :  { %20 = vsyncpa [#allocation13], 0 }
   0xb   :  { %21 = vsyncpa [#allocation8], 0 }
   0xc   :  { %22 = vsyncpa [#allocation18], 0  ;;  %s2799_s19 = smov 0   ;;  %s2801_s20 = smov 0  }
   0xd   :  { %s2803_s21 = smov 0   ;;  %s2805_s22 = smov 0  }
   0xe   :  { %s2807_s23 = smov 0   ;;  %s2809_s24 = smov 0  }
   0xf LB: > { %s2828_s0 = sadd.s32 4294967295, %s2717_s24   ;;  %p180_p0 = scmp.ne.s32.totalorder %s2701_s20, %s2697_s19  ;;  %s2717_s24 = sphi %s2809_s24, %s28_s24   ;;  %s2713_s23 = sphi %s2807_s23, %s3423_s23   ;;  %s2709_s22 = sphi %s2805_s22, %s3422_s22   ;;  %s2705_s21 = sphi %s2803_s21, %s3421_s21   ;;  %s2701_s20 = sphi %s2801_s20, %s3420_s20   ;;  %s2697_s19 = sphi %s2799_s19, %s3419_s19  }
  0x10   : > { %p3370_p1 = scmp.eq.s32.totalorder %s2828_s0, 0  ;;  %p1670_p2 = scmp.ge.s32.totalorder %s2717_s24, 1 }
  0x11   : > { %p321_p3 = scmp.lt.s32.totalorder %s2717_s24, 3  ;;  %s2719_s27 = smov [#allocation6]  }
  0x12   : > { %p2836_p4 = por %p3370_p1, %p180_p0  ;;  %s336_s28 = sshll.u32 %s2719_s27, 4  ;;  %s337_s28 = int_to_ptr.vmem [resolvable:$true] %s336_s28 }
  0x13   : > { %p2840_p5 = pnand %p1670_p2, %p321_p3  ;;  %s2720_s30 = smov [#allocation9]  }
  0x14   : > { %s3390_s25 = scalar_select %p2836_p4, 1, 0 }
  0x15   : > { %s3391_s26 = scalar_select %p2840_p5, 1, 0 }
  0x16   : > { %p2311_p6 = pneg %p2840_p5  ;;  %s353_s12 = sshll.u32 %s2720_s30, 4  ;;  %s2852_s12 = int_to_ptr.vmem [resolvable:$true] %s353_s12 }
  0x17   : > { %s3393_s1 = sld [smem:[#allocation27_spill]] }
  0x18   : > { %p2848_p7 = pnand %p2311_p6, %p3370_p1 }
  0x1a   : > { %s3392_s29 = scalar_select %p2848_p7, 1, 0 }
  0x1b   : > { %p2862_p9 = pneg %p2848_p7 }
  0x1d   : > { %s2423_s15 = scalar_lea.hbm %s3393_s1, 256 }
  0x1e   : > { %p2424_p8 = scmp.ne.s32.totalorder %s3393_s1, %s2423_s15  ;;  %p2430_p12 = scmp.lt.u32.totalorder %s2423_s15, %s3393_s1 }
  0x20   : > { %p2426_p10 = pnand %p2862_p9, %p2424_p8 }
  0x22   : > { %p2427_p11 = pneg %p2426_p10 }
  0x24   : > { %p2432_p13 = pnand %p2430_p12, %p2427_p11 }
  0x26   : > { %2435 = shalt.err (!%p2432_p13)
}
  0x27   : > { %s2436_s30 = scalar_lea.vmem %s337_s28, 256  ;;  %p2444_p6 = scmp.lt.s32.totalorder %s337_s28, %s337_s28 }
  0x28   : > { %p2437_p0 = scmp.ne.s32.totalorder %s337_s28, %s2436_s30  ;;  %p2445_p1 = scmp.lt.s32.totalorder %s2436_s30, %s2436_s30 }
  0x2a   : > { %p2439_p2 = pnand %p2437_p0, %p2862_p9  ;;  %p2446_p4 = por %p2445_p1, %p2444_p6 }
  0x2c   : > { %p2440_p3 = pneg %p2439_p2 }
  0x2e   : > { %p2447_p5 = pnand %p2446_p4, %p2440_p3 }
  0x30   : > { %2450 = shalt.err (!%p2447_p5)
}
  0x31   : > { %s3375_s13 = smov 128   ;;  %s3377_s14 = smov 8  }
  0x32   : > { %2314 = dma.hbm_to_vmem [thread:$0]  (!%p2848_p7), %s3393_s1, 256, %s337_s28, [#allocation7], %s3375_s13, %s3375_s13, %s3377_s14  }
  0x33   : > { %s3395_s2 = sld [smem:[#allocation28_spill]] }
  0x39   : > { %s2451_s27 = scalar_lea.hbm %s3395_s2, 4096 }
  0x3a   : > { %p2452_p1 = scmp.ne.s32.totalorder %s3395_s2, %s2451_s27  ;;  %p2458_p8 = scmp.lt.u32.totalorder %s2451_s27, %s3395_s2 }
  0x3c   : > { %p2454_p4 = pnand %p2452_p1, %p2862_p9 }
  0x3e   : > { %p2455_p5 = pneg %p2454_p4 }
  0x40   : > { %p2460_p10 = pnand %p2458_p8, %p2455_p5 }
  0x42   : > { %2463 = shalt.err (!%p2460_p10)
}
  0x43   : > { %s2464_s28 = scalar_lea.vmem %s2852_s12, 4096  ;;  %p2472_p0 = scmp.lt.s32.totalorder %s2852_s12, %s2852_s12 }
  0x44   : > { %p2465_p11 = scmp.ne.s32.totalorder %s2852_s12, %s2464_s28  ;;  %p2473_p2 = scmp.lt.s32.totalorder %s2464_s28, %s2464_s28 }
  0x46   : > { %p2467_p12 = pnand %p2465_p11, %p2862_p9  ;;  %p2474_p3 = por %p2473_p2, %p2472_p0 }
  0x48   : > { %p2468_p13 = pneg %p2467_p12 }
  0x4a   : > { %p2475_p6 = pnand %p2474_p3, %p2468_p13 }
  0x4c   : > { %2478 = shalt.err (!%p2475_p6)
}
  0x4d   : > { %2317 = dma.hbm_to_vmem [thread:$0]  (!%p2848_p7), %s3395_s2, 4096, %s2852_s12, [#allocation10], %s3375_s13, %s3375_s13, %s3377_s14  }
  0x4e   : > { %s37_s11 = sadd.s32 1, %s2713_s23  ;;  %s167_s15 = sadd.s32 1, %s2705_s21 }
  0x4f   : > { %p38_p1 = scmp.ge.s32.totalorder %s37_s11, 2  ;;  %p174_p4 = scmp.ne.s32.totalorder %s2705_s21, %s2701_s20 }
  0x50   : > { %p175_p5 = scmp.eq.s32.totalorder %s2717_s24, 0  ;;  %p2335_p8 = scmp.lt.s32.totalorder %s2717_s24, 2 }
  0x51   : > { %s3425_s11 = smov (%p38_p1, %s37_s11), 0  ;;  %s400_s16 = sand.u32 1, %s2717_s24  }
  0x52   : > { %3396 = sst [smem:[#allocation25_spill]] %s3425_s11  ;;  %p176_p10 = por %p175_p5, %p174_p4 }
  0x53   : > { %s164_s17 = ssub.s32 %s2713_s23, %s3425_s11  ;;  %s3379_s19 = sand.u32 1, %s2705_s21  }
  0x54   : > { %p165_p11 = scmp.eq.s32.totalorder %s164_s17, 0  ;;  %s2280_s27 = smul.u32 768, %s3379_s19 }
  0x55   : > { %p2921_p12 = pnand %p2335_p8, %p176_p10  ;;  %s2281_s28 = smul.u32 12288, %s2713_s23 }
  0x56   : > { %s2926_s12 = scalar_select %p165_p11, %s2705_s21, %s167_s15  }
  0x57   : > { %s404_s5 = scalar_lea.vmem [#allocation14], %s2280_s27  ;;  %s3399_s6 = sld [smem:[#allocation30_spill]] }
  0x58   : > { %3398 = sst [smem:[#allocation26_spill]] %s2926_s12  ;;  %s411_s10 = sshll.u32 %s404_s5, 4  ;;  %s2934_s10 = int_to_ptr.vmem [resolvable:$true] %s411_s10 }
  0x59   : > { %s2936_s17 = scalar_lea.sflag [#allocation7], %s400_s16  ;;  %p3383_p0 = pneg %p2921_p12 }
  0x5d   : > { %s2932_s1 = scalar_lea.hbm %s3399_s6, %s2281_s28  ;;  %s2484_s14 = scalar_lea.hbm %s3399_s6, 24576 }
  0x5e   : > { %s2479_s19 = scalar_lea.hbm %s2932_s1, 12288  ;;  %p2485_p6 = scmp.lt.u32.totalorder %s2932_s1, %s3399_s6 }
  0x5f   : > { %p2480_p13 = scmp.ne.s32.totalorder %s2932_s1, %s2479_s19  ;;  %p2486_p1 = scmp.lt.u32.totalorder %s2484_s14, %s2479_s19 }
  0x60   : > { %p2488_p5 = scmp.lt.u32.totalorder %s2479_s19, %s2932_s1 }
  0x61   : > { %p2482_p2 = pnand %p3383_p0, %p2480_p13  ;;  %p2487_p4 = por %p2486_p1, %p2485_p6 }
  0x63   : > { %p2483_p3 = pneg %p2482_p2  ;;  %p2489_p8 = por %p2488_p5, %p2487_p4 }
  0x65   : > { %p2490_p10 = pnand %p2489_p8, %p2483_p3 }
  0x67   : > { %2493 = shalt.err (!%p2490_p10)
}
  0x68   : > { %s2494_s16 = scalar_lea.vmem %s2934_s10, 12288  ;;  %s2723_s5 = smov [#allocation14]  }
  0x69   : > { %p2495_p11 = scmp.ne.s32.totalorder %s2934_s10, %s2494_s16  ;;  %s2499_s15 = sshll.u32 %s2723_s5, 4  ;;  %s2500_s15 = int_to_ptr.vmem [resolvable:$false] %s2499_s15 }
  0x6a   : > { %s2501_s13 = scalar_lea.vmem %s2500_s15, 24576  ;;  %p2502_p7 = scmp.lt.s32.totalorder %s2934_s10, %s2500_s15 }
  0x6b   : > { %p2497_p13 = pnand %p2495_p11, %p3383_p0  ;;  %p2503_p6 = scmp.lt.s32.totalorder %s2501_s13, %s2494_s16 }
  0x6d   : > { %p2498_p2 = pneg %p2497_p13  ;;  %p2504_p1 = por %p2503_p6, %p2502_p7 }
  0x6f   : > { %p2505_p4 = pnand %p2504_p1, %p2498_p2 }
  0x71   : > { %2508 = shalt.err (!%p2505_p4)
}
  0x72   : > { %s2724_s19 = smov 256   ;;  %s2725_s14 = smov 16  }
  0x73   : > { %2327 = dma.hbm_to_vmem [thread:$0]  (!%p2921_p12), %s2932_s1, 12288, %s2934_s10, %s2936_s17, %s2724_s19, %s2724_s19, %s2725_s14  }
  0x74   : > { %s2726_s27 = smov [#allocation11]   ;;  %s2727_s2 = smov [#allocation12]  }
  0x75   : > { %s370_s28 = sshll.u32 %s2726_s27, 4  ;;  %s383_s5 = sshll.u32 %s2727_s2, 4  ;;  %s371_s28 = int_to_ptr.vmem [resolvable:$true] %s370_s28  ;;  %s2964_s5 = int_to_ptr.vmem [resolvable:$true] %s383_s5 }
  0x76   : > { %s2509_s13 = scalar_lea.hbm %s3361_s3, 4096 }
  0x77   : > { %p2510_p7 = scmp.ne.s32.totalorder %s3361_s3, %s2509_s13  ;;  %p2516_p8 = scmp.lt.u32.totalorder %s2509_s13, %s3361_s3 }
  0x79   : > { %p2512_p3 = pnand %p2510_p7, %p2862_p9 }
  0x7b   : > { %p2513_p5 = pneg %p2512_p3 }
  0x7d   : > { %p2518_p10 = pnand %p2516_p8, %p2513_p5 }
  0x7f   : > { %2521 = shalt.err (!%p2518_p10)
}
  0x80   : > { %s2522_s2 = scalar_lea.vmem %s371_s28, 4096  ;;  %p2530_p6 = scmp.lt.s32.totalorder %s371_s28, %s371_s28 }
  0x81   : > { %p2523_p11 = scmp.ne.s32.totalorder %s371_s28, %s2522_s2  ;;  %p2531_p1 = scmp.lt.s32.totalorder %s2522_s2, %s2522_s2 }
  0x83   : > { %p2525_p13 = pnand %p2523_p11, %p2862_p9  ;;  %p2532_p4 = por %p2531_p1, %p2530_p6 }
  0x85   : > { %p2526_p2 = pneg %p2525_p13 }
  0x87   : > { %p2533_p0 = pnand %p2532_p4, %p2526_p2 }
  0x89   : > { %2536 = shalt.err (!%p2533_p0)
}
  0x8a   : > { %p3400_p7 = scmp.ne.s32.totalorder %s3392_s29, 0  ;;  %s3401_s6 = smov 8  }
  0x8b   : > { %s3402_s11 = smov 128   ;;  %s2537_s27 = scalar_lea.hbm %s3362_s4, 2048 }
  0x8c   : > { %2320 = dma.hbm_to_vmem [thread:$0]  (!%p3400_p7), %s3361_s3, 4096, %s371_s28, [#allocation10], %s3402_s11, %s3402_s11, %s3401_s6  }
  0x8d   : > { %p2538_p3 = scmp.ne.s32.totalorder %s3362_s4, %s2537_s27  ;;  %p2544_p8 = scmp.lt.u32.totalorder %s2537_s27, %s3362_s4 }
  0x8f   : > { %p2540_p0 = pnand %p2538_p3, %p2862_p9 }
  0x91   : > { %p2541_p5 = pneg %p2540_p0 }
  0x93   : > { %p2546_p10 = pnand %p2544_p8, %p2541_p5 }
  0x95   : > { %2549 = shalt.err (!%p2546_p10)
}
  0x96   : > { %s2550_s28 = scalar_lea.vmem %s2964_s5, 2048  ;;  %p2558_p6 = scmp.lt.s32.totalorder %s2964_s5, %s2964_s5 }
  0x97   : > { %p2551_p11 = scmp.ne.s32.totalorder %s2964_s5, %s2550_s28  ;;  %p2559_p1 = scmp.lt.s32.totalorder %s2550_s28, %s2550_s28 }
  0x99   : > { %p2553_p13 = pnand %p2551_p11, %p2862_p9  ;;  %p2560_p4 = por %p2559_p1, %p2558_p6 }
  0x9b   : > { %p2554_p2 = pneg %p2553_p13 }
  0x9d   : > { %p2561_p3 = pnand %p2560_p4, %p2554_p2 }
  0x9f   : > { %2564 = shalt.err (!%p2561_p3)
}
  0xa0   : > { %2323 = dma.hbm_to_vmem [thread:$0]  (!%p3400_p7), %s3362_s4, 2048, %s2964_s5, [#allocation13], %s3402_s11, %s3402_s11, %s3401_s6  }
  0xa1   : > { %s3403_s18 = sand.u32 1, %s2705_s21   ;;  %s1701_s19 = sshll.u32 %s2713_s23, 11 }
  0xa2   : > { %s1677_s10 = sshll.u32 %s3403_s18, 7  ;;  %s3019_s16 = scalar_lea.hbm %s3366_s8, %s1701_s19 }
  0xa3   : > { %s432_s29 = scalar_lea.vmem [#allocation15], %s1677_s10  ;;  %s2565_s13 = scalar_lea.hbm %s3019_s16, 2048 }
  0xa4   : > { %s439_s15 = sshll.u32 %s432_s29, 4  ;;  %p2566_p9 = scmp.ne.s32.totalorder %s3019_s16, %s2565_s13  ;;  %s3021_s15 = int_to_ptr.vmem [resolvable:$true] %s439_s15 }
  0xa5   : > { %p3404_p7 = pneg %p2921_p12  ;;  %s2570_s28 = scalar_lea.hbm %s3366_s8, 4096 }
  0xa6   : > { %p2571_p8 = scmp.lt.u32.totalorder %s3019_s16, %s3366_s8  ;;  %p2572_p10 = scmp.lt.u32.totalorder %s2570_s28, %s2565_s13 }
  0xa7   : > { %p2568_p0 = pnand %p2566_p9, %p3404_p7  ;;  %p2574_p13 = scmp.lt.u32.totalorder %s2565_s13, %s3019_s16 }
  0xa8   : > { %p2573_p11 = por %p2572_p10, %p2571_p8 }
  0xa9   : > { %p2569_p5 = pneg %p2568_p0 }
  0xaa   : > { %p2575_p2 = por %p2574_p13, %p2573_p11 }
  0xac   : > { %p2576_p6 = pnand %p2575_p2, %p2569_p5 }
  0xae   : > { %2579 = shalt.err (!%p2576_p6)
}
  0xaf   : > { %s2580_s18 = scalar_lea.vmem %s3021_s15, 2048  ;;  %p3405_p4 = pmov %p3404_p7 }
  0xb0   : > { %p2581_p1 = scmp.ne.s32.totalorder %s3021_s15, %s2580_s18  ;;  %s2728_s10 = smov [#allocation15]  }
  0xb1   : > { %s2585_s19 = sshll.u32 %s2728_s10, 4  ;;  %s2586_s19 = int_to_ptr.vmem [resolvable:$false] %s2585_s19 }
  0xb2   : > { %p2583_p3 = pnand %p2581_p1, %p3405_p4  ;;  %s2587_s14 = scalar_lea.vmem %s2586_s19, 4096 }
  0xb3   : > { %p2588_p7 = scmp.lt.s32.totalorder %s3021_s15, %s2586_s19  ;;  %p2589_p0 = scmp.lt.s32.totalorder %s2587_s14, %s2580_s18 }
  0xb4   : > { %p2584_p9 = pneg %p2583_p3 }
  0xb5   : > { %p2590_p8 = por %p2589_p0, %p2588_p7 }
  0xb7   : > { %p2591_p10 = pnand %p2590_p8, %p2584_p9 }
  0xb9   : > { %2594 = shalt.err (!%p2591_p10)
}
  0xba   : > { %2330 = dma.hbm_to_vmem [thread:$0]  (!%p2921_p12), %s3019_s16, 2048, %s3021_s15, %s2936_s17, %s3402_s11, %s3402_s11, %s3401_s6  }
  0xbb   : > { %p3406_p5 = scmp.ne.s32.totalorder %s3391_s26, 0 }
  0xbc   : > { %p3407_p11 = scmp.eq.s32.totalorder (!%p3406_p5), %s2828_s0, 0 }
  0xbd   : > { %457 = sbr.rel (%p3406_p5) target bundleno = 1874 (0x752), region = 56 }
  0xc4   : > { %2672 = dma.done.wait (%p3407_p11), [#allocation7], 256   ;;  %p3408_p13 = pmov %p3407_p11 }
  0xc5   : > { %p3409_p2 = pmov %p3407_p11 }
  0xc6   : > { %2674 = vsyncadd (%p3408_p13), [#allocation7], 4294967040 }
  0xc7   : > { %2676 = dma.done.wait (%p3409_p2), [#allocation10], 8192   ;;  %p3410_p6 = pmov %p3409_p2 }
  0xc8   : > { %p3411_p1 = pmov %p3409_p2 }
  0xc9   : > { %2678 = vsyncadd (%p3410_p6), [#allocation10], 4294959104 }
  0xca   : > { %2680 = dma.done.wait (%p3411_p1), [#allocation13], 2048   ;;  %p3412_p12 = pmov %p3411_p1 }
  0xcb   : > { %s475_s26 = sand.u32 1, %s2828_s0   ;;  %s477_s30 = sand.u32 1, %s2701_s20  }
  0xcc   : > { %2682 = vsyncadd (%p3412_p12), [#allocation13], 4294965248  ;;  %s2282_s17 = smul.u32 768, %s477_s30  ;;  %s476_s6 = scalar_lea.sflag [#allocation7], %s475_s26 }
  0xcd   : > { %p3413_p4 = scmp.ne.s32.totalorder %s3390_s25, 0 }
  0xce   : > { %s3066_s11 = scalar_lea.vmem [#allocation14], %s2282_s17 }
  0xcf   : > { %2684 = dma.done.wait (%p3413_p4), %s476_s6, 14336  }
  0xd0   : > { %2686 = vsyncadd (%p3413_p4), %s476_s6, 4294952960  ;;  %s1685_s27 = sshll.u32 %s477_s30, 7  ;;  %p535_p3 = scmp.lt.s32.totalorder %s2709_s22, 1 }
  0xd1   : > { %s3086_s25 = scalar_lea.vmem [#allocation15], %s1685_s27  ;;  %p1687_p9 = scmp.ne.s32.totalorder %s2709_s22, 0 }
  0xd2   : > { %s3074_s16 = scalar_select %p535_p3, %s2709_s22, 1 }
  0xd3   : > { %547 = sbr.rel (%p1687_p9) target bundleno = 465 (0x1d1), region = 84  ;;  %v550_v0 = vld [vmem:[#allocation12] sm:$0xff] (!%p1687_p9)  ;;  %v551_v1 = vld [vmem:[#allocation12 + $0x8] sm:$0xff] (!%p1687_p9)  ;;  %v552_v2 = vld [vmem:[#allocation12 + $0x10] sm:$0xff] (!%p1687_p9)  ;;  %s3414_s10 = sld [smem:[#allocation29_spill]] (!%p1687_p9)  ;;  %vm656_vm0 = vcmask (!%p1687_p9), 1041408  }
  0xd4   : > { %s1686_s29 = sshll.u32 %s3074_s16, 1  ;;  %s541_s5 = scalar_lea.vmem %s3367_s9, %s3074_s16  ;;  %v2016_v3 = vpack.c.bf16 (!%p1687_p9), %v551_v1, %v550_v0  ;;  %v553_v4 = vld [vmem:[#allocation12 + $0x18] sm:$0xff] (!%p1687_p9)  ;;  %v554_v6 = vld [vmem:[#allocation12 + $0x20] sm:$0xff] (!%p1687_p9)  ;;  %v555_v7 = vld [vmem:[#allocation12 + $0x28] sm:$0xff] (!%p1687_p9) }
  0xd5   : > { %s3084_s2 = scalar_lea.vmem %s3365_s7, %s1686_s29  ;;  %v2020_v5 = vpack.c.bf16 (!%p1687_p9), %v553_v4, %v552_v2  ;;  %v2024_v8 = vpack.c.bf16 (!%p1687_p9), %v555_v7, %v554_v6  ;;  %v548_v9 = vld [vmem:[#allocation6] sm:$0xff] (!%p1687_p9)  ;;  %v557_v11 = vld [vmem:[#allocation12 + $0x38] sm:$0xff] (!%p1687_p9)  ;;  %v558_v13 = vld [vmem:[#allocation12 + $0x40] sm:$0xff] (!%p1687_p9) }
  0xd6   : > { %2017 = vmatprep.subr.bf16.mxu0 (!%p1687_p9), %v2016_v3  ;;  %v556_v10 = vld [vmem:[#allocation12 + $0x30] sm:$0xff] (!%p1687_p9)  ;;  %1838 = vmatprep.mubr.f32.mxu0 (!%p1687_p9), %v548_v9  ;;  %v559_v14 = vld [vmem:[#allocation12 + $0x48] sm:$0xff] (!%p1687_p9)  ;;  %v561_v17 = vld [vmem:[#allocation12 + $0x58] sm:$0xff] (!%p1687_p9) }
  0xd7   : > { %2019 = vmatpush3.bf16.msra.mxu0 (!%p1687_p9), %v2016_v3  ;;  %v2028_v12 = vpack.c.bf16 (!%p1687_p9), %v557_v11, %v556_v10  ;;  %v2032_v15 = vpack.c.bf16 (!%p1687_p9), %v559_v14, %v558_v13  ;;  %v560_v16 = vld [vmem:[#allocation12 + $0x50] sm:$0xff] (!%p1687_p9)  ;;  %v562_v19 = vld [vmem:[#allocation12 + $0x60] sm:$0xff] (!%p1687_p9)  ;;  %v563_v20 = vld [vmem:[#allocation12 + $0x68] sm:$0xff] (!%p1687_p9) }
  0xd8   : > { %2021 = vmatprep.subr.bf16.mxu0 (!%p1687_p9), %v2020_v5  ;;  %v2036_v18 = vpack.c.bf16 (!%p1687_p9), %v561_v17, %v560_v16  ;;  %v2040_v21 = vpack.c.bf16 (!%p1687_p9), %v563_v20, %v562_v19  ;;  %v564_v22 = vld [vmem:[#allocation12 + $0x70] sm:$0xff] (!%p1687_p9)  ;;  %v565_v23 = vld [vmem:[#allocation12 + $0x78] sm:$0xff] (!%p1687_p9) }
  0xd9   : > { %v2044_v24 = vpack.c.bf16 (!%p1687_p9), %v565_v23, %v564_v22  ;;  %v549_v25 = vld [vmem:[#allocation6 + $0x8] sm:$0xff] (!%p1687_p9)  ;;  %v1688_v26 = vld [vmem:[%s3414_s10] ss:$0 sm:$0xff] (!%p1687_p9) }
  0xdb   : > { %2023 = vmatpush3.bf16.msra.mxu0 %v2020_v5 }
  0xdc   : > { %2025 = vmatprep.subr.bf16.mxu0 %v2024_v8 }
  0xdf   : > { %2027 = vmatpush3.bf16.msra.mxu0 %v2024_v8 }
  0xe0   : > { %2029 = vmatprep.subr.bf16.mxu0 %v2028_v12 }
  0xe3   : > { %2031 = vmatpush3.bf16.msra.mxu0 %v2028_v12 }
  0xe4   : > { %2033 = vmatprep.subr.bf16.mxu0 %v2032_v15 }
  0xe7   : > { %2035 = vmatpush3.bf16.msra.mxu0 %v2032_v15 }
  0xe8   : > { %2037 = vmatprep.subr.bf16.mxu0 %v2036_v18 }
  0xeb   : > { %2039 = vmatpush3.bf16.msra.mxu0 %v2036_v18 }
  0xec   : > { %2041 = vmatprep.subr.bf16.mxu0 %v2040_v21 }
  0xef   : > { %2043 = vmatpush3.bf16.msra.mxu0 %v2040_v21 }
  0xf0   : > { %2045 = vmatprep.subr.bf16.mxu0 %v2044_v24 }
  0xf3   : > { %2047 = vmatpush3.bf16.msra.mxu0 %v2044_v24 }
  0xf6   : > { %1839 = vmatmul.mubr.f32.vlgmr.msra.gmra.mrb[0].mxu0 %v549_v25 }
 0x1c9   : > { %v1840_v27 = vpop.f32.mrb[0].mxu0 }
 0x1ca   : > { %v645_v28 = vadd.f32 %v1840_v27, %v1688_v26  ;;  %v639_v29 = vpop.f32.mrb[1].mxu0 }
 0x1cb   : > { %v640_v30 = vadd.f32 %v1688_v26, %v639_v29 }
 0x1cc   : > { %649 = vst [vmem:[#allocation3 + $0x8] sm:$0xff] %v645_v28  ;;  %v653_v31 = vrot.slane %v645_v28, 6 }
 0x1cd   : > { %648 = vst [vmem:[#allocation3] sm:$0xff] %v640_v30  ;;  %v652_v32 = vrot.slane %v640_v30, 6 }
 0x1ce   : > { %v658_v33 = vsel %vm656_vm0, 0.0, %v653_v31  ;;  %662 = vst [vmem:[#allocation2 + $0x18] sm:$0x3] %v653_v31 }
 0x1cf   : > { %661 = vst [vmem:[#allocation2 + $0x10] sm:$0xff] %v658_v33  ;;  %v657_v34 = vsel %vm656_vm0, 0.0, %v652_v32  ;;  %660 = vst [vmem:[#allocation2 + $0x8] sm:$0x3] %v652_v32 }
 0x1d0   : > { %659 = vst [vmem:[#allocation2] sm:$0xff] %v657_v34 }
 0x1d1 PF: > { %v704_v35 = vld [vmem:[%s3066_s11 + $0x8] sm:$0xff]  ;;  %v706_v36 = vld [vmem:[%s3066_s11 + $0x18] sm:$0xff]  ;;  %v703_v37 = vld [vmem:[%s3066_s11] sm:$0xff]  ;;  %vm671_vm1 = vcmask 1040384   ;;  %vm680_vm2 = vcmask 1045504   ;;  %vm2731_vm3 = vmmov 0  }
 0x1d2   : > { %v2048_v38 = vpack.c.bf16 %v706_v36, %v704_v35  ;;  %v705_v39 = vld [vmem:[%s3066_s11 + $0x10] sm:$0xff]  ;;  %v708_v40 = vld [vmem:[%s3066_s11 + $0x28] sm:$0xff]  ;;  %v710_v41 = vld [vmem:[%s3066_s11 + $0x38] sm:$0xff]  ;;  %s1257_s26 = sld [smem:[#allocation5]]  ;;  %p1694_p7 = scmp.ne.s32.totalorder %s2709_s22, 1 }
 0x1d3   : > { %v2050_v42 = vpack.c.bf16 %v705_v39, %v703_v37  ;;  %v2052_v43 = vpack.c.bf16 %v710_v41, %v708_v40  ;;  %v707_v44 = vld [vmem:[%s3066_s11 + $0x20] sm:$0xff]  ;;  %v709_v45 = vld [vmem:[%s3066_s11 + $0x30] sm:$0xff]  ;;  %v712_v46 = vld [vmem:[%s3066_s11 + $0x48] sm:$0xff] }
 0x1d4   : > { %2049 = vmatprep.subr.bf16.mxu0 %v2048_v38  ;;  %v714_v47 = vld [vmem:[%s3066_s11 + $0x58] sm:$0xff]  ;;  %v2054_v48 = vpack.c.bf16 %v709_v45, %v707_v44  ;;  %v711_v50 = vld [vmem:[%s3066_s11 + $0x40] sm:$0xff]  ;;  %v713_v51 = vld [vmem:[%s3066_s11 + $0x50] sm:$0xff] }
 0x1d5   : > { %2051 = vmatpush1.bf16.msra.mxu0 %v2050_v42  ;;  %v2056_v49 = vpack.c.bf16 %v714_v47, %v712_v46  ;;  %v716_v52 = vld [vmem:[%s3066_s11 + $0x68] sm:$0xff]  ;;  %v718_v53 = vld [vmem:[%s3066_s11 + $0x78] sm:$0xff]  ;;  %v2058_v54 = vpack.c.bf16 %v713_v51, %v711_v50  ;;  %v715_v56 = vld [vmem:[%s3066_s11 + $0x60] sm:$0xff] }
 0x1d6   : > { %2053 = vmatprep.subr.bf16.mxu0 %v2052_v43  ;;  %v2060_v55 = vpack.c.bf16 %v718_v53, %v716_v52  ;;  %v717_v57 = vld [vmem:[%s3066_s11 + $0x70] sm:$0xff]  ;;  %v720_v58 = vld [vmem:[%s3066_s11 + $0x88] sm:$0xff]  ;;  %v722_v59 = vld [vmem:[%s3066_s11 + $0x98] sm:$0xff] }
 0x1d7   : > { %v2062_v60 = vpack.c.bf16 %v717_v57, %v715_v56  ;;  %v2064_v61 = vpack.c.bf16 %v722_v59, %v720_v58  ;;  %v719_v62 = vld [vmem:[%s3066_s11 + $0x80] sm:$0xff]  ;;  %v721_v63 = vld [vmem:[%s3066_s11 + $0x90] sm:$0xff]  ;;  %v724_v0 = vld [vmem:[%s3066_s11 + $0xa8] sm:$0xff] }
 0x1d8   : > { %v726_v1 = vld [vmem:[%s3066_s11 + $0xb8] sm:$0xff]  ;;  %v2066_v2 = vpack.c.bf16 %v721_v63, %v719_v62  ;;  %v723_v4 = vld [vmem:[%s3066_s11 + $0xa0] sm:$0xff]  ;;  %v725_v5 = vld [vmem:[%s3066_s11 + $0xb0] sm:$0xff] }
 0x1d9   : > { %2055 = vmatpush1.bf16.msra.mxu0 %v2054_v48  ;;  %v2068_v3 = vpack.c.bf16 %v726_v1, %v724_v0  ;;  %v728_v6 = vld [vmem:[%s3066_s11 + $0xc8] sm:$0xff]  ;;  %v730_v7 = vld [vmem:[%s3066_s11 + $0xd8] sm:$0xff]  ;;  %v2070_v8 = vpack.c.bf16 %v725_v5, %v723_v4  ;;  %v727_v9 = vld [vmem:[%s3066_s11 + $0xc0] sm:$0xff] }
 0x1da   : > { %2057 = vmatprep.subr.bf16.mxu0 %v2056_v49  ;;  %v2072_v10 = vpack.c.bf16 %v730_v7, %v728_v6  ;;  %v729_v11 = vld [vmem:[%s3066_s11 + $0xd0] sm:$0xff]  ;;  %v3120_v12 = vld [vmem:[#allocation2] sm:$0xff]  ;;  %v3122_v13 = vld [vmem:[#allocation2 + $0x8] sm:$0x3] }
 0x1db   : > { %v732_v14 = vld [vmem:[%s3066_s11 + $0xe8] sm:$0xff]  ;;  %v734_v15 = vld [vmem:[%s3066_s11 + $0xf8] sm:$0xff]  ;;  %v672_v16 = vrot.slane %v3120_v12, 7  ;;  %v673_v17 = vrot.slane %v3122_v13, 7  ;;  %v2074_v18 = vpack.c.bf16 %v729_v11, %v727_v9  ;;  %v731_v22 = vld [vmem:[%s3066_s11 + $0xe0] sm:$0xff] }
 0x1dc   : > { %v2076_v21 = vpack.c.bf16 %v734_v15, %v732_v14  ;;  %v733_v23 = vld [vmem:[%s3066_s11 + $0xf0] sm:$0xff]  ;;  %v736_v25 = vld [vmem:[%s3066_s11 + $0x108] sm:$0xff]  ;;  %v738_v26 = vld [vmem:[%s3066_s11 + $0x118] sm:$0xff] }
 0x1dd   : > { %2059 = vmatpush1.bf16.msra.mxu0 %v2058_v54  ;;  %v674_v19 = vsel %vm671_vm1, %v672_v16, %v673_v17  ;;  %v684_v20 = vrot.slane %v672_v16, 2  ;;  %v2078_v28 = vpack.c.bf16 %v733_v23, %v731_v22  ;;  %v2080_v29 = vpack.c.bf16 %v738_v26, %v736_v25  ;;  %v735_v30 = vld [vmem:[%s3066_s11 + $0x100] sm:$0xff]  ;;  %v737_v31 = vld [vmem:[%s3066_s11 + $0x110] sm:$0xff]  ;;  %v740_v32 = vld [vmem:[%s3066_s11 + $0x128] sm:$0xff] }
 0x1de   : > { %2061 = vmatprep.subr.bf16.mxu0 %v2060_v55  ;;  %v685_v24 = vrot.slane %v674_v19, 2  ;;  %v742_v33 = vld [vmem:[%s3066_s11 + $0x138] sm:$0xff]  ;;  %v2082_v34 = vpack.c.bf16 %v737_v31, %v735_v30  ;;  %v739_v36 = vld [vmem:[%s3066_s11 + $0x120] sm:$0xff]  ;;  %v741_v37 = vld [vmem:[%s3066_s11 + $0x130] sm:$0xff] }
 0x1df   : > { %v2084_v35 = vpack.c.bf16 %v742_v33, %v740_v32  ;;  %v744_v38 = vld [vmem:[%s3066_s11 + $0x148] sm:$0xff]  ;;  %v746_v39 = vld [vmem:[%s3066_s11 + $0x158] sm:$0xff]  ;;  %v2086_v40 = vpack.c.bf16 %v741_v37, %v739_v36  ;;  %v743_v42 = vld [vmem:[%s3066_s11 + $0x140] sm:$0xff] }
 0x1e0   : > { %v686_v27 = vsel %vm680_vm2, %v684_v20, %v685_v24  ;;  %v2088_v41 = vpack.c.bf16 %v746_v39, %v744_v38  ;;  %v745_v43 = vld [vmem:[%s3066_s11 + $0x150] sm:$0xff]  ;;  %v748_v44 = vld [vmem:[%s3066_s11 + $0x168] sm:$0xff]  ;;  %v750_v45 = vld [vmem:[%s3066_s11 + $0x178] sm:$0xff]  ;;  %v681_v20 = vrot.slane %v3120_v12, 2 }
 0x1e1   : > { %2063 = vmatpush1.bf16.msra.mxu0 %v2062_v60  ;;  %875 = vmatprep.mubr.f32.mxu0 %v686_v27  ;;  %v2090_v46 = vpack.c.bf16 %v745_v43, %v743_v42  ;;  %v2092_v47 = vpack.c.bf16 %v750_v45, %v748_v44  ;;  %v747_v48 = vld [vmem:[%s3066_s11 + $0x160] sm:$0xff]  ;;  %v749_v49 = vld [vmem:[%s3066_s11 + $0x170] sm:$0xff]  ;;  %v752_v50 = vld [vmem:[%s3066_s11 + $0x188] sm:$0xff] }
 0x1e2   : > { %2065 = vmatprep.subr.bf16.mxu0 %v2064_v61  ;;  %v754_v51 = vld [vmem:[%s3066_s11 + $0x198] sm:$0xff]  ;;  %v2094_v52 = vpack.c.bf16 %v749_v49, %v747_v48  ;;  %v751_v54 = vld [vmem:[%s3066_s11 + $0x180] sm:$0xff]  ;;  %v753_v55 = vld [vmem:[%s3066_s11 + $0x190] sm:$0xff] }
 0x1e3   : > { %v2096_v53 = vpack.c.bf16 %v754_v51, %v752_v50  ;;  %v756_v56 = vld [vmem:[%s3066_s11 + $0x1a8] sm:$0xff]  ;;  %v758_v57 = vld [vmem:[%s3066_s11 + $0x1b8] sm:$0xff]  ;;  %v2098_v58 = vpack.c.bf16 %v753_v55, %v751_v54  ;;  %v755_v60 = vld [vmem:[%s3066_s11 + $0x1a0] sm:$0xff] }
 0x1e4   : > { %v2100_v59 = vpack.c.bf16 %v758_v57, %v756_v56  ;;  %v757_v61 = vld [vmem:[%s3066_s11 + $0x1b0] sm:$0xff]  ;;  %v760_v62 = vld [vmem:[%s3066_s11 + $0x1c8] sm:$0xff]  ;;  %v762_v63 = vld [vmem:[%s3066_s11 + $0x1d8] sm:$0xff] }
 0x1e5   : > { %2067 = vmatpush1.bf16.msra.mxu0 %v2066_v2  ;;  %v3158_v0 = vld [vmem:[#allocation2 + $0x10] sm:$0xff]  ;;  %v3160_v1 = vld [vmem:[#allocation2 + $0x18] sm:$0x3]  ;;  %v2102_v2 = vpack.c.bf16 %v757_v61, %v755_v60  ;;  %v759_v4 = vld [vmem:[%s3066_s11 + $0x1c0] sm:$0xff] }
 0x1e6   : > { %2069 = vmatprep.subr.bf16.mxu0 %v2068_v3  ;;  %v2104_v3 = vpack.c.bf16 %v762_v63, %v760_v62  ;;  %v761_v5 = vld [vmem:[%s3066_s11 + $0x1d0] sm:$0xff]  ;;  %v764_v6 = vld [vmem:[%s3066_s11 + $0x1e8] sm:$0xff]  ;;  %v766_v7 = vld [vmem:[%s3066_s11 + $0x1f8] sm:$0xff]  ;;  %v676_v9 = vrot.slane %v3160_v1, 7  ;;  %v689_v31 = vrot.slane %v3158_v0, 2  ;;  %v690_v32 = vrot.slane %v3160_v1, 2 }
 0x1e7   : > { %v2108_v11 = vpack.c.bf16 %v766_v7, %v764_v6  ;;  %v763_v14 = vld [vmem:[%s3066_s11 + $0x1e0] sm:$0xff]  ;;  %v765_v15 = vld [vmem:[%s3066_s11 + $0x1f0] sm:$0xff]  ;;  %v768_v16 = vld [vmem:[%s3066_s11 + $0x208] sm:$0xff] }
 0x1e8   : > { %v770_v17 = vld [vmem:[%s3066_s11 + $0x218] sm:$0xff]  ;;  %v2110_v19 = vpack.c.bf16 %v765_v15, %v763_v14  ;;  %v767_v23 = vld [vmem:[%s3066_s11 + $0x200] sm:$0xff]  ;;  %v769_v24 = vld [vmem:[%s3066_s11 + $0x210] sm:$0xff] }
 0x1e9   : > { %2071 = vmatpush1.bf16.msra.mxu0 %v2070_v8  ;;  %v675_v8 = vrot.slane %v3158_v0, 7  ;;  %v2112_v22 = vpack.c.bf16 %v770_v17, %v768_v16  ;;  %v772_v27 = vld [vmem:[%s3066_s11 + $0x228] sm:$0xff]  ;;  %v2114_v30 = vpack.c.bf16 %v769_v24, %v767_v23  ;;  %v778_v38 = vld [vmem:[%s3066_s11 + $0x258] sm:$0xff]  ;;  %v775_v42 = vld [vmem:[%s3066_s11 + $0x240] sm:$0xff] }
 0x1ea   : > { %2073 = vmatprep.subr.bf16.mxu0 %v2072_v10  ;;  %v2106_v10 = vpack.c.bf16 %v761_v5, %v759_v4  ;;  %v776_v37 = vld [vmem:[%s3066_s11 + $0x248] sm:$0xff]  ;;  %v777_v43 = vld [vmem:[%s3066_s11 + $0x250] sm:$0xff]  ;;  %v782_v45 = vld [vmem:[%s3066_s11 + $0x278] sm:$0xff] }
 0x1eb   : > { %v692_v25 = vrot.slane %v675_v8, 2  ;;  %v780_v44 = vld [vmem:[%s3066_s11 + $0x268] sm:$0xff]  ;;  %v779_v49 = vld [vmem:[%s3066_s11 + $0x260] sm:$0xff]  ;;  %v781_v50 = vld [vmem:[%s3066_s11 + $0x270] sm:$0xff] }
 0x1ec   : > { %v2124_v48 = vpack.c.bf16 %v782_v45, %v780_v44  ;;  %v784_v51 = vld [vmem:[%s3066_s11 + $0x288] sm:$0xff]  ;;  %v783_v55 = vld [vmem:[%s3066_s11 + $0x280] sm:$0xff]  ;;  %v785_v56 = vld [vmem:[%s3066_s11 + $0x290] sm:$0xff] }
 0x1ed   : > { %2075 = vmatpush1.bf16.msra.mxu0 %v2074_v18  ;;  %v677_v18 = vsel %vm671_vm1, %v675_v8, %v676_v9  ;;  %v788_v57 = vld [vmem:[%s3066_s11 + $0x2a8] sm:$0xff]  ;;  %v787_v61 = vld [vmem:[%s3066_s11 + $0x2a0] sm:$0xff]  ;;  %v789_v62 = vld [vmem:[%s3066_s11 + $0x2b0] sm:$0xff] }
 0x1ee   : > { %2077 = vmatprep.subr.bf16.mxu0 %v2076_v21  ;;  %v682_v21 = vrot.slane %v3122_v13, 2  ;;  %v693_v26 = vrot.slane %v677_v18, 2  ;;  %v792_v63 = vld [vmem:[%s3066_s11 + $0x2c8] sm:$0xff]  ;;  %v791_v5 = vld [vmem:[%s3066_s11 + $0x2c0] sm:$0xff]  ;;  %v793_v6 = vld [vmem:[%s3066_s11 + $0x2d0] sm:$0xff] }
 0x1ef   : > { %v796_v7 = vld [vmem:[%s3066_s11 + $0x2e8] sm:$0xff]  ;;  %v798_v8 = vld [vmem:[%s3066_s11 + $0x2f8] sm:$0xff]  ;;  %v2138_v9 = vpack.c.bf16 %v793_v6, %v791_v5  ;;  %v797_v14 = vld [vmem:[%s3066_s11 + $0x2f0] sm:$0xff] }
 0x1f0   : > { %v694_v36 = vsel %vm680_vm2, %v692_v25, %v693_v26  ;;  %v979_v16 = vld [vmem:[%s3086_s25] sm:$0xff]  ;;  %v980_v17 = vld [vmem:[%s3086_s25 + $0x8] sm:$0xff]  ;;  %v985_v25 = vld [vmem:[%s3086_s25 + $0x30] sm:$0xff] }
 0x1f1   : > { %2079 = vmatpush1.bf16.msra.mxu0 %v2078_v28  ;;  %v774_v28 = vld [vmem:[%s3066_s11 + $0x238] sm:$0xff]  ;;  %v2144_v18 = vpack.c.bf16 %v980_v17, %v979_v16  ;;  %v984_v23 = vld [vmem:[%s3086_s25 + $0x28] sm:$0xff]  ;;  %v799_v44 = vld [vmem:[%s3084_s2] sm:$0x3] }
 0x1f2   : > { %2081 = vmatprep.subr.bf16.mxu0 %v2080_v29  ;;  %v683_v29 = vsel %vm680_vm2, %v681_v20, %v682_v21  ;;  %v2116_v33 = vpack.c.bf16 %v774_v28, %v772_v27  ;;  %v982_v20 = vld [vmem:[%s3086_s25 + $0x18] sm:$0xff]  ;;  %v987_v28 = vld [vmem:[%s3086_s25 + $0x40] sm:$0xff]  ;;  %v1089_v16 = vld [vmem:[#allocation9 + $0x30] sm:$0xff] }
 0x1f3   : > { %2145 = vmatprep.subr.bf16.mxu1 %v2144_v18  ;;  %v986_v26 = vld [vmem:[%s3086_s25 + $0x38] sm:$0xff] }
 0x1f4   : > { %2147 = vmatpush3.bf16.msra.mxu1 %v2144_v18  ;;  %v2156_v27 = vpack.c.bf16 %v986_v26, %v985_v25  ;;  %v1090_v17 = vld [vmem:[#allocation9 + $0x38] sm:$0xff]  ;;  %v1095_v25 = vld [vmem:[#allocation9 + $0x60] sm:$0xff]  ;;  %v1096_v26 = vld [vmem:[#allocation9 + $0x68] sm:$0xff] }
 0x1f5   : > { %2083 = vmatpush1.bf16.msra.mxu0 %v2082_v34  ;;  %v771_v34 = vld [vmem:[%s3066_s11 + $0x220] sm:$0xff]  ;;  %v2186_v18 = vpack.c.bf16 %v1090_v17, %v1089_v16 }
 0x1f6   : > { %2085 = vmatprep.subr.bf16.mxu0 %v2084_v35  ;;  %v773_v35 = vld [vmem:[%s3066_s11 + $0x230] sm:$0xff] }
 0x1f7   : > { %v2118_v39 = vpack.c.bf16 %v773_v35, %v771_v34  ;;  %v991_v34 = vld [vmem:[%s3086_s25 + $0x60] sm:$0xff]  ;;  %v992_v35 = vld [vmem:[%s3086_s25 + $0x68] sm:$0xff] }
 0x1f9   : > { %2087 = vmatpush1.bf16.msra.mxu0 %v2086_v40  ;;  %v691_v40 = vsel %vm680_vm2, %v689_v31, %v690_v32  ;;  %v989_v31 = vld [vmem:[%s3086_s25 + $0x50] sm:$0xff]  ;;  %v990_v32 = vld [vmem:[%s3086_s25 + $0x58] sm:$0xff] }
 0x1fa   : > { %2089 = vmatprep.subr.bf16.mxu0 %v2088_v41  ;;  %v2120_v41 = vpack.c.bf16 %v778_v38, %v776_v37  ;;  %v2168_v37 = vpack.c.bf16 %v992_v35, %v991_v34  ;;  %v994_v38 = vld [vmem:[%s3086_s25 + $0x78] sm:$0xff]  ;;  %v1077_v34 = vld [vmem:[#allocation3] sm:$0xff] }
 0x1fd   : > { %2091 = vmatpush1.bf16.msra.mxu0 %v2090_v46  ;;  %v2122_v46 = vpack.c.bf16 %v777_v43, %v775_v42 }
 0x1fe   : > { %2093 = vmatprep.subr.bf16.mxu0 %v2092_v47  ;;  %v2729_v47 = vmov 0.0  }
 0x201   : > { %2095 = vmatpush1.bf16.msra.mxu0 %v2094_v52  ;;  %v786_v52 = vld [vmem:[%s3066_s11 + $0x298] sm:$0xff] }
 0x202   : > { %2097 = vmatprep.subr.bf16.mxu0 %v2096_v53  ;;  %v2126_v53 = vpack.c.bf16 %v781_v50, %v779_v49  ;;  %v2128_v54 = vpack.c.bf16 %v786_v52, %v784_v51 }
 0x205   : > { %2099 = vmatpush1.bf16.msra.mxu0 %v2098_v58  ;;  %v790_v58 = vld [vmem:[%s3066_s11 + $0x2b8] sm:$0xff] }
 0x206   : > { %2101 = vmatprep.subr.bf16.mxu0 %v2100_v59  ;;  %v2130_v59 = vpack.c.bf16 %v785_v56, %v783_v55  ;;  %v2132_v60 = vpack.c.bf16 %v790_v58, %v788_v57 }
 0x209   : > { %2103 = vmatpush1.bf16.msra.mxu0 %v2102_v2  ;;  %v794_v2 = vld [vmem:[%s3066_s11 + $0x2d8] sm:$0xff] }
 0x20a   : > { %2105 = vmatprep.subr.bf16.mxu0 %v2104_v3  ;;  %v2134_v3 = vpack.c.bf16 %v789_v62, %v787_v61  ;;  %v2136_v4 = vpack.c.bf16 %v794_v2, %v792_v63  ;;  %v1083_v2 = vld [vmem:[#allocation9] sm:$0xff] }
 0x20d   : > { %2107 = vmatpush1.bf16.msra.mxu0 %v2106_v10  ;;  %v2140_v10 = vpack.c.bf16 %v798_v8, %v796_v7  ;;  %v1085_v8 = vld [vmem:[#allocation9 + $0x10] sm:$0xff] }
 0x20e   : > { %2109 = vmatprep.subr.bf16.mxu0 %v2108_v11  ;;  %v795_v11 = vld [vmem:[%s3066_s11 + $0x2e0] sm:$0xff] }
 0x20f   : > { %v2142_v15 = vpack.c.bf16 %v797_v14, %v795_v11  ;;  %v1087_v11 = vld [vmem:[#allocation9 + $0x20] sm:$0xff]  ;;  %v1088_v14 = vld [vmem:[#allocation9 + $0x28] sm:$0xff] }
 0x211   : > { %2111 = vmatpush1.bf16.msra.mxu0 %v2110_v19  ;;  %v981_v19 = vld [vmem:[%s3086_s25 + $0x10] sm:$0xff] }
 0x212   : > { %2113 = vmatprep.subr.bf16.mxu0 %v2112_v22  ;;  %v2148_v21 = vpack.c.bf16 %v982_v20, %v981_v19  ;;  %v983_v22 = vld [vmem:[%s3086_s25 + $0x20] sm:$0xff]  ;;  %v1092_v20 = vld [vmem:[#allocation9 + $0x48] sm:$0xff] }
 0x213   : > { %v2152_v24 = vpack.c.bf16 %v984_v23, %v983_v22  ;;  %v1091_v19 = vld [vmem:[#allocation9 + $0x40] sm:$0xff]  ;;  %v1093_v22 = vld [vmem:[#allocation9 + $0x50] sm:$0xff]  ;;  %v1094_v23 = vld [vmem:[#allocation9 + $0x58] sm:$0xff] }
 0x214   : > { %876 = vmatmul.mubr.f32.vlgmr.msra.gmra.mrb[0].mxu0 %v683_v29  ;;  %2149 = vmatprep.subr.bf16.mxu1 %v2148_v21  ;;  %v988_v29 = vld [vmem:[%s3086_s25 + $0x48] sm:$0xff] }
 0x215   : > { %2115 = vmatpush1.bf16.msra.mxu0 %v2114_v30  ;;  %881 = vmatprep.mubr.f32.mxu0 %v694_v36  ;;  %v2160_v30 = vpack.c.bf16 %v988_v29, %v987_v28  ;;  %v993_v36 = vld [vmem:[%s3086_s25 + $0x70] sm:$0xff]  ;;  %v1098_v29 = vld [vmem:[#allocation9 + $0x78] sm:$0xff] }
 0x216   : > { %2117 = vmatprep.subr.bf16.mxu0 %v2116_v33  ;;  %2151 = vmatpush3.bf16.msra.mxu1 %v2148_v21  ;;  %v2164_v33 = vpack.c.bf16 %v990_v32, %v989_v31  ;;  %v2189_v21 = vpack.c.bf16 %v1092_v20, %v1091_v19  ;;  %v1097_v28 = vld [vmem:[#allocation9 + $0x70] sm:$0xff]  ;;  %v1693_v31 = vld [vmem:[%s541_s5] ss:$0 sm:$0xff]  ;;  %v1281_v20 = vld [vmem:[#allocation11 + $0x8] sm:$0xff] }
 0x217   : > { %2153 = vmatprep.subr.bf16.mxu1 %v2152_v24  ;;  %v1280_v19 = vld [vmem:[#allocation11] sm:$0xff] }
 0x218   : > { %882 = vmatmul.mubr.f32.gmra.mrb[2].mxu0 %v691_v40  ;;  %v2730_v40 = vmov 0.0|0.0  }
 0x219   : > { %2119 = vmatpush1.bf16.msra.mxu0 %v2118_v39  ;;  %952 = vmatprep.mubr.f32.mxu0 %v2729_v47  ;;  %v2172_v39 = vpack.c.bf16 %v994_v38, %v993_v36  ;;  %v1099_v36 = vld [vmem:[#allocation9 + $0x80] sm:$0xff] }
 0x21a   : > { %2121 = vmatprep.subr.bf16.mxu0 %v2120_v41  ;;  %2155 = vmatpush3.bf16.msra.mxu1 %v2152_v24  ;;  %v801_v41 = vlaneseq  ;;  %v2192_v24 = vpack.c.bf16 %v1094_v23, %v1093_v22  ;;  %v2225_v22 = vpack.c.bf16 %v1281_v20, %v1280_v19  ;;  %v1283_v23 = vld [vmem:[#allocation11 + $0x18] sm:$0xff] }
 0x21b   : > { %2157 = vmatprep.subr.bf16.mxu1 %v2156_v27 }
 0x21c   : > { %v802_v42 = vshrl.u32 %v801_v41, 7 }
 0x21d   : > { %2123 = vmatpush1.bf16.msra.mxu0 %v2122_v46 }
 0x21e   : > { %2125 = vmatprep.subr.bf16.mxu0 %v2124_v48  ;;  %2159 = vmatpush3.bf16.msra.mxu1 %v2156_v27  ;;  %v807_v43 = vsub.s32 1, %v802_v42  ;;  %v803_v58 = vsub.s32 0, %v802_v42  ;;  %v2195_v27 = vpack.c.bf16 %v1096_v26, %v1095_v25  ;;  %v1286_v26 = vld [vmem:[#allocation11 + $0x30] sm:$0xff] }
 0x21f   : > { %2161 = vmatprep.subr.bf16.mxu1 %v2160_v30 }
 0x220   : > { %v808_v45 = vrot.slane %v799_v44, %v807_v43  ;;  %v1101_v43 = vld [vmem:[#allocation9 + $0x90] sm:$0xff] }
 0x221   : > { %2127 = vmatpush1.bf16.msra.mxu0 %v2126_v53 }
 0x222   : > { %2129 = vmatprep.subr.bf16.mxu0 %v2128_v54  ;;  %2163 = vmatpush3.bf16.msra.mxu1 %v2160_v30  ;;  %v2198_v30 = vpack.c.bf16 %v1098_v29, %v1097_v28  ;;  %v1288_v29 = vld [vmem:[#allocation11 + $0x40] sm:$0xff] }
 0x223   : > { %2165 = vmatprep.subr.bf16.mxu1 %v2164_v33 }
 0x225   : > { %2131 = vmatpush1.bf16.msra.mxu0 %v2130_v59 }
 0x226   : > { %2133 = vmatprep.subr.bf16.mxu0 %v2132_v60  ;;  %2167 = vmatpush3.bf16.msra.mxu1 %v2164_v33  ;;  %v804_v60 = vrot.slane %v799_v44, %v803_v58  ;;  %v1102_v44 = vld [vmem:[#allocation9 + $0x98] sm:$0xff] }
 0x227   : > { %2169 = vmatprep.subr.bf16.mxu1 %v2168_v37 }
 0x229   : > { %2135 = vmatpush1.bf16.msra.mxu0 %v2134_v3  ;;  %v1084_v3 = vld [vmem:[#allocation9 + $0x8] sm:$0xff] }
 0x22a   : > { %2137 = vmatprep.subr.bf16.mxu0 %v2136_v4  ;;  %2171 = vmatpush3.bf16.msra.mxu1 %v2168_v37  ;;  %v2177_v6 = vpack.c.bf16 %v1084_v3, %v1083_v2  ;;  %v1100_v37 = vld [vmem:[#allocation9 + $0x88] sm:$0xff]  ;;  %v1113_v2 = vld [vmem:[#allocation9 + $0xf0] sm:$0xff]  ;;  %v1114_v3 = vld [vmem:[#allocation9 + $0xf8] sm:$0xff] }
 0x22b   : > { %2173 = vmatprep.subr.bf16.mxu1 %v2172_v39 }
 0x22d   : > { %2139 = vmatpush1.bf16.msra.mxu0 %v2138_v9  ;;  %v1086_v9 = vld [vmem:[#allocation9 + $0x18] sm:$0xff] }
 0x22e   : > { %2141 = vmatprep.subr.bf16.mxu0 %v2140_v10  ;;  %2175 = vmatpush3.bf16.msra.mxu1 %v2172_v39  ;;  %v2180_v10 = vpack.c.bf16 %v1086_v9, %v1085_v8  ;;  %v2201_v39 = vpack.c.bf16 %v1100_v37, %v1099_v36  ;;  %v1256_v9 = vand.u32 127, %v801_v41  ;;  %v1284_v41 = vld [vmem:[#allocation11 + $0x20] sm:$0xff]  ;;  %v1290_v36 = vld [vmem:[#allocation11 + $0x50] sm:$0xff]  ;;  %v1291_v37 = vld [vmem:[#allocation11 + $0x58] sm:$0xff] }
 0x22f   : > { %2176 = vmatprep.subr.bf16.mxu1 %v2730_v40 }
 0x231   : > { %2143 = vmatpush1.bf16.msra.mxu0 %v2142_v15  ;;  %v2183_v15 = vpack.c.bf16 %v1088_v14, %v1087_v11 }
 0x232   : > { %2224 = vmatprep.subr.bf16.mxu0 %v2730_v40 }
 0x234   : > { %953 = vmatmul.mubr.f32.vlgmr.msra.gmra.mrb[0].mxu0 %v3120_v12 }
 0x235   : > { %958 = vmatprep.mubr.f32.mxu0 %v2729_v47  ;;  %2226 = vmatpush3.bf16.msra.mxu0 %v2225_v22 }
 0x236   : > { %2227 = vmatprep.subr.bf16.mxu0 %v2730_v40 }
 0x238   : > { %959 = vmatmul.mubr.f32.gmra.mrb[2].mxu0 %v3158_v0 }
 0x239   : > { %1978 = vmatprep.mubr.msk.f32.mxu0 %vm2731_vm3, %v2729_v47 }
 0x307   : > { %v954_v46 = vpop.f32.mrb[0].mxu0 }
 0x308   : > { %v956_v48 = vpop.f32.mrb[1].mxu0  ;;  %v2272_v61 = vadd.f32 %v954_v46, %v804_v60  ;;  %v1103_v46 = vld [vmem:[#allocation9 + $0xa0] sm:$0xff] }
 0x309   : > { %v2273_v49 = vadd.f32 %v956_v48, %v808_v45  ;;  %v1104_v48 = vld [vmem:[#allocation9 + $0xa8] sm:$0xff] }
 0x30b   : > { %v1691_v50 = vmul.f32 -1.442695, %v2273_v49  ;;  %v960_v51 = vpop.f32.mrb[2].mxu0  ;;  %v2207_v49 = vpack.c.bf16 %v1104_v48, %v1103_v46  ;;  %v1294_v48 = vld [vmem:[#allocation11 + $0x70] sm:$0xff] }
 0x30c   : > { %v962_v52 = vpop.f32.mrb[3].mxu0  ;;  %v2274_v4 = vadd.f32 %v960_v51, %v804_v60  ;;  %v1106_v51 = vld [vmem:[#allocation9 + $0xb8] sm:$0xff]  ;;  %v1112_v60 = vld [vmem:[#allocation9 + $0xe8] sm:$0xff] }
 0x30d   : > { %2407 = vpow2.f32 %v1691_v50  ;;  %v2275_v53 = vadd.f32 %v962_v52, %v808_v45  ;;  %v2204_v45 = vpack.c.bf16 %v1102_v44, %v1101_v43  ;;  %v1105_v50 = vld [vmem:[#allocation9 + $0xb0] sm:$0xff]  ;;  %v1292_v43 = vld [vmem:[#allocation11 + $0x60] sm:$0xff]  ;;  %v1293_v44 = vld [vmem:[#allocation11 + $0x68] sm:$0xff] }
 0x30e   : > { %v2210_v52 = vpack.c.bf16 %v1106_v51, %v1105_v50  ;;  %v2243_v46 = vpack.c.bf16 %v1293_v44, %v1292_v43  ;;  %v1296_v51 = vld [vmem:[#allocation11 + $0x80] sm:$0xff] }
 0x30f   : > { %v1692_v54 = vmul.f32 -1.442695, %v2275_v53  ;;  %v1107_v53 = vld [vmem:[#allocation9 + $0xc0] sm:$0xff] }
 0x311   : > { %2409 = vpow2.f32 %v1692_v54  ;;  %v1108_v54 = vld [vmem:[#allocation9 + $0xc8] sm:$0xff] }
 0x317   : > { %v2408_v55 = vpop.eup %2407 }
 0x318   : > { %v971_v56 = vadd.f32 1.0, %v2408_v55  ;;  %v2213_v55 = vpack.c.bf16 %v1108_v54, %v1107_v53  ;;  %v1298_v54 = vld [vmem:[#allocation11 + $0x90] sm:$0xff] }
 0x31a   : > { %2411 = vrcp.f32 %v971_v56  ;;  %v1109_v56 = vld [vmem:[#allocation9 + $0xd0] sm:$0xff] }
 0x31b   : > { %v2410_v57 = vpop.eup %2409 }
 0x31c   : > { %v972_v59 = vadd.f32 1.0, %v2410_v57  ;;  %v1110_v57 = vld [vmem:[#allocation9 + $0xd8] sm:$0xff] }
 0x31d   : > { %v2216_v58 = vpack.c.bf16 %v1110_v57, %v1109_v56  ;;  %v1300_v57 = vld [vmem:[#allocation11 + $0xa0] sm:$0xff] }
 0x31e   : > { %2413 = vrcp.f32 %v972_v59  ;;  %v1111_v59 = vld [vmem:[#allocation9 + $0xe0] sm:$0xff] }
 0x324   : > { %v2412_v62 = vpop.eup %2411 }
 0x325   : > { %v3234_v63 = vmul.f32 %v2412_v62, %v2272_v61  ;;  %v2219_v61 = vpack.c.bf16 %v1112_v60, %v1111_v59 }
 0x327   : > { %1873 = vmatprep.mubr.f32.mxu1 %v3234_v63 }
 0x328   : > { %v2414_v5 = vpop.eup %2413 }
 0x329   : > { %v3237_v7 = vmul.f32 %v2414_v5, %v2274_v4  ;;  %v1078_v4 = vld [vmem:[#allocation3 + $0x8] sm:$0xff]  ;;  %v2222_v5 = vpack.c.bf16 %v1114_v3, %v1113_v2  ;;  %v1304_v3 = vld [vmem:[#allocation11 + $0xc0] sm:$0xff] }
 0x32b   : > { %1874 = vmatmul.mubr.f32.vlgmr.msra.gmra.mrb[0].mxu1 %v3237_v7 }
 0x32c   : > { %2178 = vmatpush3.bf16.msra.mxu1 %v2177_v6  ;;  %1908 = vmatprep.mubr.msk.f32.mxu1 %vm2731_vm3, %v2729_v47 }
 0x32d   : > { %2179 = vmatprep.subr.bf16.mxu1 %v2730_v40 }
 0x330   : > { %2181 = vmatpush3.bf16.msra.mxu1 %v2180_v10  ;;  %v1258_v10 = vstv %s1257_s26 }
 0x331   : > { %2182 = vmatprep.subr.bf16.mxu1 %v2730_v40  ;;  %vm1259_vm4 = vcmp.lt.s32.totalorder %v1256_v9, %v1258_v10  ;;  %v1308_v10 = vld [vmem:[#allocation11 + $0xe0] sm:$0xff] }
 0x334   : > { %2184 = vmatpush3.bf16.msra.mxu1 %v2183_v15 }
 0x335   : > { %2185 = vmatprep.subr.bf16.mxu1 %v2730_v40 }
 0x338   : > { %2187 = vmatpush3.bf16.msra.mxu1 %v2186_v18 }
 0x339   : > { %2188 = vmatprep.subr.bf16.mxu1 %v2730_v40 }
 0x33c   : > { %2190 = vmatpush3.bf16.msra.mxu1 %v2189_v21  ;;  %v1282_v21 = vld [vmem:[#allocation11 + $0x10] sm:$0xff] }
 0x33d   : > { %2191 = vmatprep.subr.bf16.mxu1 %v2730_v40 }
 0x340   : > { %2193 = vmatpush3.bf16.msra.mxu1 %v2192_v24  ;;  %v1285_v24 = vld [vmem:[#allocation11 + $0x28] sm:$0xff] }
 0x341   : > { %2194 = vmatprep.subr.bf16.mxu1 %v2730_v40  ;;  %v2231_v25 = vpack.c.bf16 %v1285_v24, %v1284_v41 }
 0x344   : > { %2196 = vmatpush3.bf16.msra.mxu1 %v2195_v27  ;;  %v1287_v27 = vld [vmem:[#allocation11 + $0x38] sm:$0xff] }
 0x345   : > { %2197 = vmatprep.subr.bf16.mxu1 %v2730_v40  ;;  %v2234_v28 = vpack.c.bf16 %v1287_v27, %v1286_v26 }
 0x348   : > { %2199 = vmatpush3.bf16.msra.mxu1 %v2198_v30  ;;  %v1289_v30 = vld [vmem:[#allocation11 + $0x48] sm:$0xff] }
 0x349   : > { %2200 = vmatprep.subr.bf16.mxu1 %v2730_v40 }
 0x3fe   : > { %v1875_v32 = vpop.f32.mrb[0].mxu1 }
 0x3ff   : > { %v1068_v33 = vpop.f32.mrb[1].mxu1  ;;  %v1074_v62 = vadd.f32 %v1875_v32, %v1693_v31 }
 0x400   : > { %v1069_v35 = vadd.f32 %v1693_v31, %v1068_v33  ;;  %v2237_v31 = vpack.c.bf16 %v1289_v30, %v1288_v29 }
 0x401   : > { %v1080_v6 = vadd.f32 %v1078_v4, %v1074_v62  ;;  %v1303_v62 = vld [vmem:[#allocation11 + $0xb8] sm:$0xff]  ;;  %v1305_v4 = vld [vmem:[#allocation11 + $0xc8] sm:$0xff] }
 0x402   : > { %v1079_v38 = vadd.f32 %v1077_v34, %v1069_v35 }
 0x403   : > { %v1082_v8 = vmul.f32 0.70710677, %v1080_v6  ;;  %v1306_v6 = vld [vmem:[#allocation11 + $0xd0] sm:$0xff] }
 0x404   : > { %v1081_v42 = vmul.f32 0.70710677, %v1079_v38  ;;  %v2240_v38 = vpack.c.bf16 %v1291_v37, %v1290_v36 }
 0x406   : > { %1909 = vmatmul.mubr.f32.vlgmr.msra.gmra.mrb[2].mxu1 %v1081_v42 }
 0x407   : > { %2202 = vmatpush3.bf16.msra.mxu1 %v2201_v39  ;;  %1943 = vmatprep.mubr.msk.f32.mxu1 %vm2731_vm3, %v2729_v47 }
 0x408   : > { %2203 = vmatprep.subr.bf16.mxu1 %v2730_v40 }
 0x40b   : > { %2205 = vmatpush3.bf16.msra.mxu1 %v2204_v45 }
 0x40c   : > { %2206 = vmatprep.subr.bf16.mxu1 %v2730_v40 }
 0x40f   : > { %2208 = vmatpush3.bf16.msra.mxu1 %v2207_v49  ;;  %v1295_v49 = vld [vmem:[#allocation11 + $0x78] sm:$0xff] }
 0x410   : > { %2209 = vmatprep.subr.bf16.mxu1 %v2730_v40  ;;  %v2246_v50 = vpack.c.bf16 %v1295_v49, %v1294_v48 }
 0x413   : > { %2211 = vmatpush3.bf16.msra.mxu1 %v2210_v52  ;;  %v1297_v52 = vld [vmem:[#allocation11 + $0x88] sm:$0xff] }
 0x414   : > { %2212 = vmatprep.subr.bf16.mxu1 %v2730_v40  ;;  %v2249_v53 = vpack.c.bf16 %v1297_v52, %v1296_v51 }
 0x417   : > { %2214 = vmatpush3.bf16.msra.mxu1 %v2213_v55  ;;  %v1299_v55 = vld [vmem:[#allocation11 + $0x98] sm:$0xff] }
 0x418   : > { %2215 = vmatprep.subr.bf16.mxu1 %v2730_v40  ;;  %v2252_v56 = vpack.c.bf16 %v1299_v55, %v1298_v54 }
 0x41b   : > { %2217 = vmatpush3.bf16.msra.mxu1 %v2216_v58  ;;  %v1301_v58 = vld [vmem:[#allocation11 + $0xa8] sm:$0xff] }
 0x41c   : > { %2218 = vmatprep.subr.bf16.mxu1 %v2730_v40  ;;  %v2255_v60 = vpack.c.bf16 %v1301_v58, %v1300_v57 }
 0x41f   : > { %2220 = vmatpush3.bf16.msra.mxu1 %v2219_v61  ;;  %v1302_v61 = vld [vmem:[#allocation11 + $0xb0] sm:$0xff] }
 0x420   : > { %2221 = vmatprep.subr.bf16.mxu1 %v2730_v40  ;;  %v2258_v2 = vpack.c.bf16 %v1303_v62, %v1302_v61 }
 0x423   : > { %2223 = vmatpush3.bf16.msra.mxu1 %v2222_v5  ;;  %v2261_v5 = vpack.c.bf16 %v1305_v4, %v1304_v3 }
 0x424   : > { %2248 = vmatprep.subr.bf16.mxu1 %v2730_v40 }
 0x426   : > { %1944 = vmatmul.mubr.f32.vlgmr.msra.gmra.mrb[4].mxu1 %v1082_v8  ;;  %v1307_v8 = vld [vmem:[#allocation11 + $0xd8] sm:$0xff] }
 0x427   : > { %2013 = vmatprep.mubr.msk.f32.mxu1 %vm2731_vm3, %v2729_v47  ;;  %v2228_v47 = vpack.c.bf16 %v1283_v23, %v1282_v21  ;;  %2250 = vmatpush3.bf16.msra.mxu1 %v2249_v53  ;;  %v2264_v9 = vpack.c.bf16 %v1307_v8, %v1306_v6 }
 0x428   : > { %2251 = vmatprep.subr.bf16.mxu1 %v2730_v40 }
 0x429   : > { %2229 = vmatpush3.bf16.msra.mxu0 %v2228_v47 }
 0x42a   : > { %2230 = vmatprep.subr.bf16.mxu0 %v2730_v40 }
 0x42b   : > { %2253 = vmatpush3.bf16.msra.mxu1 %v2252_v56 }
 0x42c   : > { %2254 = vmatprep.subr.bf16.mxu1 %v2730_v40 }
 0x42d   : > { %2232 = vmatpush3.bf16.msra.mxu0 %v2231_v25 }
 0x42e   : > { %2233 = vmatprep.subr.bf16.mxu0 %v2730_v40 }
 0x42f   : > { %2256 = vmatpush3.bf16.msra.mxu1 %v2255_v60 }
 0x430   : > { %2257 = vmatprep.subr.bf16.mxu1 %v2730_v40 }
 0x431   : > { %2235 = vmatpush3.bf16.msra.mxu0 %v2234_v28 }
 0x432   : > { %2236 = vmatprep.subr.bf16.mxu0 %v2730_v40 }
 0x433   : > { %2259 = vmatpush3.bf16.msra.mxu1 %v2258_v2 }
 0x434   : > { %2260 = vmatprep.subr.bf16.mxu1 %v2730_v40 }
 0x435   : > { %2238 = vmatpush3.bf16.msra.mxu0 %v2237_v31 }
 0x436   : > { %2239 = vmatprep.subr.bf16.mxu0 %v2730_v40 }
 0x437   : > { %2262 = vmatpush3.bf16.msra.mxu1 %v2261_v5 }
 0x438   : > { %2263 = vmatprep.subr.bf16.mxu1 %v2730_v40 }
 0x439   : > { %2241 = vmatpush3.bf16.msra.mxu0 %v2240_v38 }
 0x43a   : > { %2242 = vmatprep.subr.bf16.mxu0 %v2730_v40 }
 0x43b   : > { %2265 = vmatpush3.bf16.msra.mxu1 %v2264_v9 }
 0x43c   : > { %2266 = vmatprep.subr.bf16.mxu1 %v2730_v40 }
 0x43d   : > { %2244 = vmatpush3.bf16.msra.mxu0 %v2243_v46 }
 0x43e   : > { %2245 = vmatprep.subr.bf16.mxu0 %v2730_v40 }
 0x441   : > { %2247 = vmatpush3.bf16.msra.mxu0 %v2246_v50 }
 0x4d9   : > { %v1181_v11 = vpop.f32.mrb[2].mxu1 }
 0x4da   : > { %v1910_v14 = vpop.f32.mrb[3].mxu1  ;;  %v1260_v15 = vsel %vm1259_vm4, %v1181_v11, -1e+30  ;;  %v1309_v11 = vld [vmem:[#allocation11 + $0xe8] sm:$0xff] }
 0x4db   : > { %1262 = vmax.xlane.f32.xlu0 %v1260_v15  ;;  %v2267_v14 = vpack.c.bf16 %v1309_v11, %v1308_v10 }
 0x4dd   : > { %2268 = vmatpush3.bf16.msra.mxu1 %v2267_v14 }
 0x4de   : > { %2269 = vmatprep.subr.bf16.mxu1 %v2730_v40 }
 0x4f9   : > { %v1251_v16 = vpop.f32.mrb[4].mxu1 }
 0x4fa   : > { %v1945_v17 = vpop.f32.mrb[5].mxu1  ;;  %v1261_v18 = vsel %vm1259_vm4, %v1251_v16, -1e+30  ;;  %v1311_v16 = vld [vmem:[#allocation11 + $0xf8] sm:$0xff] }
 0x4fb   : > { %1264 = vmax.xlane.f32.xlu0 %v1261_v18 }
 0x568   : > { %v1263_v32 = vpop.xlane.xlu0 %1262 }
 0x569   : > { %v1266_v33 = vsub.f32 %v1260_v15, %v1263_v32  ;;  %v1310_v15 = vld [vmem:[#allocation11 + $0xf0] sm:$0xff] }
 0x56a   : > { %v2270_v17 = vpack.c.bf16 %v1311_v16, %v1310_v15 }
 0x56b   : > { %v1268_v34 = vmul.f32 1.442695, %v1266_v33 }
 0x56c   : > { %2271 = vmatpush3.bf16.msra.mxu1 %v2270_v17 }
 0x56d   : > { %2415 = vpow2.f32 %v1268_v34 }
 0x577   : > { %v3275_v35 = vpop.eup %2415 }
 0x578   : > { %1272 = vadd.xlane.f32.xlu1 %v3275_v35 }
 0x588   : > { %v1265_v39 = vpop.xlane.xlu0 %1264 }
 0x589   : > { %v1267_v42 = vsub.f32 %v1261_v18, %v1265_v39 }
 0x58b   : > { %v1270_v45 = vmul.f32 1.442695, %v1267_v42 }
 0x58d   : > { %2417 = vpow2.f32 %v1270_v45 }
 0x597   : > { %v2418_v59 = vpop.eup %2417 }
 0x598   : > { %1274 = vadd.xlane.f32.xlu1 %v2418_v59 }
 0x605   : > { %v1273_v18 = vpop.xlane.xlu1 %1272 }
 0x606   : > { %2419 = vrcp.f32 %v1273_v18 }
 0x610   : > { %v2420_v19 = vpop.eup %2419 }
 0x611   : > { %v1278_v20 = vmul.f32 %v2420_v19, %v3275_v35 }
 0x613   : > { %1979 = vmatmul.mubr.f32.vlgmr.msra.gmra.mrb[4].mxu0 %v1278_v20  ;;  %1480 = vst [vmem:[#allocation17] sm:$0xff] (!%p1694_p7), %v1278_v20 }
 0x625   : > { %v1275_v21 = vpop.xlane.xlu1 %1274 }
 0x626   : > { %2421 = vrcp.f32 %v1275_v21 }
 0x630   : > { %v2422_v22 = vpop.eup %2421 }
 0x631   : > { %v1279_v23 = vmul.f32 %v2422_v22, %v2418_v59 }
 0x633   : > { %2014 = vmatmul.mubr.f32.vlgmr.msra.gmra.mrb[6].mxu1 %v1279_v23  ;;  %1481 = vst [vmem:[#allocation17 + $0x8] sm:$0xff] (!%p1694_p7), %v1279_v23 }
 0x6e6   : > { %v1378_v47 = vpop.f32.mrb[4].mxu0 }
 0x6e7   : > { %v1379_v41 = vadd.f32 %v1378_v47, %v3234_v63  ;;  %v1980_v24 = vpop.f32.mrb[5].mxu0 }
 0x6e9   : > { %v1452_v25 = vmul.f32 0.70710677, %v1379_v41 }
 0x6eb   : > { %v1456_v26 = vrot.slane %v1452_v25, 6 }
 0x6ed   : > { %v1460_v40 = vadd.f32 %v1456_v26, %v3120_v12  ;;  %v1461_v27 = vadd.f32 %v1456_v26, %v3122_v13 }
 0x6ef   : > { %v1464_v28 = vmul.f32 0.70710677, %v1460_v40  ;;  %v1465_v29 = vmul.f32 0.70710677, %v1461_v27 }
 0x6f1   : > { %1468 = vst [vmem:[#allocation2] sm:$0xfc] %v1464_v28  ;;  %1469 = vst [vmem:[#allocation2 + $0x8] sm:$0x3] %v1465_v29 }
 0x6f2   : > { %1476 = vst [vmem:[#allocation16 - $0x2] sm:$0xfc] (!%p1694_p7), %v1464_v28  ;;  %1477 = vst [vmem:[#allocation16 + $0x6] sm:$0x3] (!%p1694_p7), %v1465_v29 }
 0x706   : > { %v1448_v30 = vpop.f32.mrb[6].mxu1 }
 0x707   : > { %v1449_v31 = vadd.f32 %v1448_v30, %v3237_v7  ;;  %v2015_v32 = vpop.f32.mrb[7].mxu1 }
 0x709   : > { %v1453_v33 = vmul.f32 0.70710677, %v1449_v31 }
 0x70b   : > { %v1457_v34 = vrot.slane %v1453_v33, 6  ;;  %1475 = sbr.rel (%p1694_p7) target bundleno = 1811 (0x713), region = 88 }
 0x70d   : > { %v1462_v35 = vadd.f32 %v1457_v34, %v3158_v0  ;;  %v1463_v63 = vadd.f32 %v1457_v34, %v3160_v1 }
 0x70f   : > { %v1466_v36 = vmul.f32 0.70710677, %v1462_v35  ;;  %v1467_v37 = vmul.f32 0.70710677, %v1463_v63 }
 0x711   : > { %1470 = vst [vmem:[#allocation2 + $0x10] sm:$0xfc] %v1466_v36  ;;  %1471 = vst [vmem:[#allocation2 + $0x18] sm:$0x3] %v1467_v37 }
 0x712   : > { %1478 = vst [vmem:[#allocation16 + $0x6] sm:$0xfc] %v1466_v36  ;;  %1479 = vst [vmem:[#allocation16 + $0xe] sm:$0x3] %v1467_v37 }
 0x713 PF: > { %p2340_p0 = scmp.eq.s32.totalorder %s2828_s0, 1  ;;  %s2732_s30 = smov [#allocation16]  }
 0x714   : > { %s1491_s17 = sshll.u32 %s2732_s30, 4  ;;  %s1492_s17 = int_to_ptr.vmem [resolvable:$true] %s1491_s17 }
 0x715   : > { %s2595_s6 = scalar_lea.vmem %s1492_s17, 256  ;;  %p2602_p11 = scmp.lt.s32.totalorder %s1492_s17, %s1492_s17 }
 0x716   : > { %p2596_p8 = scmp.ne.s32.totalorder %s1492_s17, %s2595_s6  ;;  %p2603_p13 = scmp.lt.s32.totalorder %s2595_s6, %s2595_s6 }
 0x718   : > { %p2597_p10 = pnand %p2596_p8, %p2340_p0  ;;  %p2604_p2 = por %p2603_p13, %p2602_p11 }
 0x71a   : > { %p2598_p5 = pneg %p2597_p10 }
 0x71c   : > { %p2605_p6 = pnand %p2604_p2, %p2598_p5 }
 0x71e   : > { %2608 = shalt.err (!%p2605_p6)
}
 0x71f   : > { %s3415_s27 = sld [smem:[#allocation31_spill]] }
 0x725   : > { %s2609_s16 = scalar_lea.hbm %s3415_s27, 256 }
 0x726   : > { %p2610_p1 = scmp.ne.s32.totalorder %s3415_s27, %s2609_s16  ;;  %p2615_p3 = scmp.lt.u32.totalorder %s2609_s16, %s3415_s27 }
 0x728   : > { %p2611_p12 = pnand %p2610_p1, %p2340_p0 }
 0x72a   : > { %p2612_p4 = pneg %p2611_p12 }
 0x72c   : > { %p2617_p9 = pnand %p2615_p3, %p2612_p4 }
 0x72e   : > { %2620 = shalt.err (!%p2617_p9)
}
 0x72f   : > { %s2733_s1 = smov 128   ;;  %s2734_s28 = smov 8  }
 0x730   : > { %2304 = dma.vmem_to_hbm [thread:$0]  (%p2340_p0), %s1492_s17, 256, %s3415_s27, [#allocation8], %s2733_s1, %s2733_s1, %s2734_s28  }
 0x731   : > { %s2735_s12 = smov [#allocation17]  }
 0x732   : > { %s1507_s18 = sshll.u32 %s2735_s12, 4  ;;  %s1508_s18 = int_to_ptr.vmem [resolvable:$true] %s1507_s18 }
 0x733   : > { %s2621_s10 = scalar_lea.vmem %s1508_s18, 256  ;;  %p2628_p5 = scmp.lt.s32.totalorder %s1508_s18, %s1508_s18 }
 0x734   : > { %p2622_p7 = scmp.ne.s32.totalorder %s1508_s18, %s2621_s10  ;;  %p2629_p11 = scmp.lt.s32.totalorder %s2621_s10, %s2621_s10 }
 0x736   : > { %p2623_p8 = pnand %p2622_p7, %p2340_p0  ;;  %p2630_p13 = por %p2629_p11, %p2628_p5 }
 0x738   : > { %p2624_p10 = pneg %p2623_p8 }
 0x73a   : > { %p2631_p2 = pnand %p2630_p13, %p2624_p10 }
 0x73c   : > { %2634 = shalt.err (!%p2631_p2)
}
 0x73d   : > { %s3416_s26 = sld [smem:[#allocation32_spill]] }
 0x743   : > { %s2635_s30 = scalar_lea.hbm %s3416_s26, 256 }
 0x744   : > { %p2636_p6 = scmp.ne.s32.totalorder %s3416_s26, %s2635_s30  ;;  %p2641_p4 = scmp.lt.u32.totalorder %s2635_s30, %s3416_s26 }
 0x746   : > { %p2637_p1 = pnand %p2636_p6, %p2340_p0 }
 0x748   : > { %p2638_p12 = pneg %p2637_p1 }
 0x74a   : > { %p2643_p3 = pnand %p2641_p4, %p2638_p12 }
 0x74c   : > { %2646 = shalt.err (!%p2643_p3)
}
 0x74d   : > { %2306 = dma.vmem_to_hbm [thread:$0]  (%p2340_p0), %s1508_s18, 256, %s3416_s26, [#allocation18], %s2733_s1, %s2733_s1, %s2734_s28  }
 0x74e   : > { %2688 = dma.done.wait (%p2340_p0), [#allocation8], 256  }
 0x74f   : > { %2690 = vsyncadd (%p2340_p0), [#allocation8], 4294967040 }
 0x750   : > { %2692 = dma.done.wait (%p2340_p0), [#allocation18], 256  }
 0x751   : > { %2694 = vsyncadd (%p2340_p0), [#allocation18], 4294967040 }
 0x752 PF: > { %s28_s24 = sadd.s32 1, %s2717_s24   ;;  %s3417_s15 = sld [smem:[#allocation26_spill]] }
 0x753   : > { %p25_p9 = scmp.ge.s32.totalorder %s28_s24, 4   ;;  %s3418_s13 = sld [smem:[#allocation25_spill]] }
 0x754   : > { %s3419_s19 = smov %s2701_s20  ;;  %s3420_s20 = smov %s2705_s21 }
 0x755   : > { %s3422_s22 = smov %s2713_s23  ;;  %27 = sbr.rel (!%p25_p9) target bundleno = 15 (0xf), region = 146 }
 0x758   : > { %s3421_s21 = smov %s3417_s15 }
 0x759   : > { %s3423_s23 = smov %s3418_s13 }
 0x75c   :  { %1527 = vsyncpa [#allocation7], 1 }
 0x75d   :  { %1529 = vsyncpa [#allocation7 + $0x1], 1 }
 0x75e   :  { %1530 = vsyncpa [#allocation10], 1 }
 0x75f   :  { %1531 = vsyncpa [#allocation13], 1 }
 0x760   :  { %1532 = vsyncpa [#allocation8], 1 }
 0x761   :  { %1534 = vsyncpa [#allocation8 + $0x1], 1 }
 0x762   :  { %1535 = vsyncpa [#allocation18], 1 }

</bundles_post_ra>
